<compile_context>
chip_gen: v5e
topology: v5e:2x2
jax: 0.10.0
libtpu: 0.0.40
codegen_flags: <defaults>
</compile_context>

<pallas_src>
import numpy as np
import jax
import jax.numpy as jnp
from jax.experimental import pallas as pl
from jax.experimental.pallas import tpu as pltpu

# ---- small ViT-style config (synthetic stand-in for vit-base-patch16-224) ----
BATCH = 2
CHANNELS = 3
IMG = 32
PATCH = 16
GH = IMG // PATCH                           # 2
GW = IMG // PATCH                           # 2
NUM_PATCHES = GH * GW                       # 4
SEQ = NUM_PATCHES + 1                       # 5 (CLS + patches)
HIDDEN = 32
NUM_HEADS = 4
HEAD_DIM = HIDDEN // NUM_HEADS              # 8
MLP = 4 * HIDDEN                            # 128
NUM_LAYERS = 2
NUM_LABELS = 4
LN_EPS = 1e-12                              # HF ViT layer_norm_eps
PATCH_DIM = CHANNELS * PATCH * PATCH        # 768
H3 = 3 * HIDDEN                             # 96 (fused QKV width)


# --------------------------- fused kernel ---------------------------

def _layer_norm(x, g, b):
    mu = jnp.mean(x, axis=-1, keepdims=True)
    var = jnp.mean((x - mu) ** 2, axis=-1, keepdims=True)
    return (x - mu) * jax.lax.rsqrt(var + LN_EPS) * g + b


def vit_kernel(px_ref, wpe_ref, emb_ref, ln_ref, watt_ref, batt_ref,
               w1_ref, b1_ref, w2_ref, b2_ref, lnf_ref, wcls_ref, bcls_ref,
               o_ref, x_ref):
    l = pl.program_id(1)
    scale = 1.0 / np.sqrt(HEAD_DIM)

    # ---- patch embedding (only at the first layer step of each image) ----
    # CLS / positional / conv-bias terms are pre-folded into `emb`; the matmul only
    # contributes to the NUM_PATCHES real rows.
    @pl.when(l == 0)
    def _():
        pe = jnp.dot(px_ref[0].astype(jnp.bfloat16), wpe_ref[...],
                     preferred_element_type=jnp.float32)              # (NUM_PATCHES, D)
        pe_full = jnp.concatenate(
            [jnp.zeros((1, HIDDEN), jnp.float32), pe], axis=0)        # CLS row = 0
        x_ref[...] = emb_ref[...] + pe_full

    ln = ln_ref[0]                                                    # (4, D) f32
    x = x_ref[...]                                                    # (SEQ, D) f32

    # ---- multi-head self-attention (pre-LN), fused head-major QKV projection ----
    h = _layer_norm(x, ln[0:1, :], ln[1:2, :])
    qkv = (jnp.dot(h.astype(jnp.bfloat16), watt_ref[0, :, 0:H3],
                   preferred_element_type=jnp.float32)
           + batt_ref[0, :, 0:H3])                                    # (SEQ, 3D)

    attn = jnp.zeros_like(x)
    # 4 heads, static unroll; each head reads one contiguous 24-lane block of qkv.
    for hd in range(NUM_HEADS):
        base = hd * 3 * HEAD_DIM
        blk = qkv[:, base:base + 3 * HEAD_DIM]                        # (SEQ, 24)
        q = blk[:, 0:HEAD_DIM]
        k = blk[:, HEAD_DIM:2 * HEAD_DIM]
        v = blk[:, 2 * HEAD_DIM:3 * HEAD_DIM]
        # contract last dims directly (no explicit k.T transpose)
        s = jax.lax.dot_general(q, k, (((1,), (1,)), ((), ())),
                                preferred_element_type=jnp.float32) * scale
        s = s - jnp.max(s, axis=-1, keepdims=True)                    # keep for robustness
        p = jnp.exp(s)
        p = p * pl.reciprocal(jnp.sum(p, axis=-1, keepdims=True), approx=True)
        ctx = jnp.dot(p, v, preferred_element_type=jnp.float32)       # (SEQ, HEAD_DIM)
        # fold Wo per head: sum_h ctx_h @ Wo[h*hd:(h+1)*hd, :] == concat(ctx) @ Wo
        attn = attn + jnp.dot(
            ctx.astype(jnp.bfloat16),
            watt_ref[0, hd * HEAD_DIM:(hd + 1) * HEAD_DIM, H3:4 * HIDDEN],
            preferred_element_type=jnp.float32)
    x = x + attn + batt_ref[0, :, H3:4 * HIDDEN]                      # residual 1

    # ---- MLP (pre-LN, exact erf-GELU to match HF ViT) ----
    h2 = _layer_norm(x, ln[2:3, :], ln[3:4, :])
    m = (jnp.dot(h2.astype(jnp.bfloat16), w1_ref[0],
                 preferred_element_type=jnp.float32) + b1_ref[0])
    m = 0.5 * m * (1.0 + jax.lax.erf(m * (1.0 / np.sqrt(2.0))))
    m = (jnp.dot(m.astype(jnp.bfloat16), w2_ref[0],
                 preferred_element_type=jnp.float32) + b2_ref[0])
    x = x + m                                                         # residual 2
    x_ref[...] = x

    # ---- final LayerNorm + classifier on the CLS row (only at the last layer step) ----
    @pl.when(l == pl.num_programs(1) - 1)
    def _():
        cls = _layer_norm(x[0:1, :], lnf_ref[0:1, :], lnf_ref[1:2, :])   # (1, D)
        o_ref[0] = (jnp.dot(cls.astype(jnp.bfloat16), wcls_ref[...],
                            preferred_element_type=jnp.float32) + bcls_ref[...])


# --------------------------- wrapper ---------------------------

def _const_spec(shape):
    return pl.BlockSpec(shape, lambda b, l: (0,) * len(shape))


def _layer_spec(shape):
    return pl.BlockSpec(shape, lambda b, l: (l, 0, 0))


def vit_forward(x, packed):
    B = x.shape[0]
    # Single fused transpose/reshape im2col; patch vectors ordered (c, ph, pw) to match
    # the Conv2d weight. No zero-CLS concatenate, no (B*SEQ, 768) buffer.
    patches = x.reshape(B, CHANNELS, GH, PATCH, GW, PATCH)
    patches = patches.transpose(0, 2, 4, 1, 3, 5).reshape(B, NUM_PATCHES, PATCH_DIM)

    out = pl.pallas_call(
        vit_kernel,
        out_shape=jax.ShapeDtypeStruct((BATCH, 1, NUM_LABELS), jnp.float32),
        grid=(BATCH, NUM_LAYERS),
        in_specs=[
            pl.BlockSpec((1, NUM_PATCHES, PATCH_DIM), lambda b, l: (b, 0, 0)),  # patches
            _const_spec((PATCH_DIM, HIDDEN)),                                    # w_pe (bf16)
            _const_spec((SEQ, HIDDEN)),                                          # emb
            _layer_spec((1, 4, HIDDEN)),                                         # ln (per layer)
            _layer_spec((1, HIDDEN, 4 * HIDDEN)),                                # w_att (bf16)
            _layer_spec((1, 1, 4 * HIDDEN)),                                     # b_att
            _layer_spec((1, HIDDEN, MLP)),                                       # w1 (bf16)
            _layer_spec((1, 1, MLP)),                                            # b1
            _layer_spec((1, MLP, HIDDEN)),                                       # w2 (bf16)
            _layer_spec((1, 1, HIDDEN)),                                         # b2
            _const_spec((2, HIDDEN)),                                            # ln_f
            _const_spec((HIDDEN, NUM_LABELS)),                                   # w_cls (bf16)
            _const_spec((1, NUM_LABELS)),                                        # b_cls
        ],
        out_specs=pl.BlockSpec((1, 1, NUM_LABELS), lambda b, l: (b, 0, 0)),
        scratch_shapes=[pltpu.VMEM((SEQ, HIDDEN), jnp.float32)],                 # resident x
        compiler_params=pltpu.CompilerParams(
            dimension_semantics=("parallel", "arbitrary"),
            vmem_limit_bytes=32 * 1024 * 1024),
    )(patches, packed["w_pe"], packed["emb"], packed["ln"], packed["w_att"],
      packed["b_att"], packed["w1"], packed["b1"], packed["w2"], packed["b2"],
      packed["ln_f"], packed["w_cls"], packed["b_cls"])
    return out.reshape(BATCH, NUM_LABELS)


# --------------------------- params ---------------------------

def init_params(key):
    def normal(k, shape, std=0.02):
        return (std * jax.random.normal(k, shape)).astype(jnp.float32)

    keys = iter(jax.random.split(key, 16 + 12 * NUM_LAYERS))
    params = {
        "w_pe": normal(next(keys), (PATCH_DIM, HIDDEN)),
        "b_pe": normal(next(keys), (1, HIDDEN)),
        "cls": normal(next(keys), (1, 1, HIDDEN)),
        "pos": normal(next(keys), (1, SEQ, HIDDEN)),
        "ln_g": jnp.ones((1, HIDDEN), jnp.float32),
        "ln_b": jnp.zeros((1, HIDDEN), jnp.float32),
        "w_cls": normal(next(keys), (HIDDEN, NUM_LABELS)),
        "b_cls": jnp.zeros((1, NUM_LABELS), jnp.float32),
        "layers": [],
    }
    for _ in range(NUM_LAYERS):
        params["layers"].append({
            "ln1_g": jnp.ones((1, HIDDEN), jnp.float32),
            "ln1_b": jnp.zeros((1, HIDDEN), jnp.float32),
            "wq": normal(next(keys), (HIDDEN, HIDDEN)),
            "bq": jnp.zeros((1, HIDDEN), jnp.float32),
            "wk": normal(next(keys), (HIDDEN, HIDDEN)),
            "bk": jnp.zeros((1, HIDDEN), jnp.float32),
            "wv": normal(next(keys), (HIDDEN, HIDDEN)),
            "bv": jnp.zeros((1, HIDDEN), jnp.float32),
            "wo": normal(next(keys), (HIDDEN, HIDDEN)),
            "bo": jnp.zeros((1, HIDDEN), jnp.float32),
            "ln2_g": jnp.ones((1, HIDDEN), jnp.float32),
            "ln2_b": jnp.zeros((1, HIDDEN), jnp.float32),
            "w1": normal(next(keys), (HIDDEN, MLP)),
            "b1": jnp.zeros((1, MLP), jnp.float32),
            "w2": normal(next(keys), (MLP, HIDDEN)),
            "b2": jnp.zeros((1, HIDDEN), jnp.float32),
        })
    return params


def pack_params(p):
    """One-time packing: stacked per-layer slabs, head-major QKV, bf16 weights / f32 biases."""
    layers = p["layers"]

    def att_weight(l):        # [q0|k0|v0|q1|k1|v1|...|Wo]  -> (D, 4D)
        cols = []
        for h in range(NUM_HEADS):
            sl = slice(h * HEAD_DIM, (h + 1) * HEAD_DIM)
            cols += [l["wq"][:, sl], l["wk"][:, sl], l["wv"][:, sl]]
        cols.append(l["wo"])
        return jnp.concatenate(cols, axis=1)

    def att_bias(l):
        cols = []
        for h in range(NUM_HEADS):
            sl = slice(h * HEAD_DIM, (h + 1) * HEAD_DIM)
            cols += [l["bq"][:, sl], l["bk"][:, sl], l["bv"][:, sl]]
        cols.append(l["bo"])
        return jnp.concatenate(cols, axis=1)

    ln = jnp.stack([jnp.concatenate([l["ln1_g"], l["ln1_b"], l["ln2_g"], l["ln2_b"]],
                                    axis=0) for l in layers])              # (L, 4, D) f32
    w_att = jnp.stack([att_weight(l) for l in layers]).astype(jnp.bfloat16)  # (L, D, 4D)
    b_att = jnp.stack([att_bias(l) for l in layers])                        # (L, 1, 4D) f32
    w1 = jnp.stack([l["w1"] for l in layers]).astype(jnp.bfloat16)          # (L, D, MLP)
    b1 = jnp.stack([l["b1"] for l in layers])                               # (L, 1, MLP)
    w2 = jnp.stack([l["w2"] for l in layers]).astype(jnp.bfloat16)          # (L, MLP, D)
    b2 = jnp.stack([l["b2"] for l in layers])                               # (L, 1, D)

    # Additive per-image embedding: CLS row -> cls + pos[0]; patch row j -> conv-bias + pos[j].
    emb = jnp.concatenate([p["cls"][0] + p["pos"][0, 0:1, :],
                           p["b_pe"] + p["pos"][0, 1:, :]], axis=0)         # (SEQ, D) f32

    ln_f = jnp.concatenate([p["ln_g"], p["ln_b"]], axis=0)                  # (2, D) f32

    return {"w_pe": p["w_pe"].astype(jnp.bfloat16), "emb": emb, "ln": ln,
            "w_att": w_att, "b_att": b_att, "w1": w1, "b1": b1, "w2": w2, "b2": b2,
            "ln_f": ln_f, "w_cls": p["w_cls"].astype(jnp.bfloat16), "b_cls": p["b_cls"]}


if __name__ == "__main__":
    key = jax.random.PRNGKey(0)
    pkey, xkey = jax.random.split(key)
    params = init_params(pkey)
    packed = pack_params(params)
    x = jax.random.normal(xkey, (BATCH, CHANNELS, IMG, IMG), dtype=jnp.float32)

    logits = jax.jit(vit_forward)(x, packed)
    jax.block_until_ready(logits)
    assert logits.shape == (BATCH, NUM_LABELS) and logits.dtype == jnp.float32
    print("KERNEL_OK")
</pallas_src>

<mosaic_0001>
module attributes {stable_mosaic.version = 11 : i64} {
  func.func @vit_kernel(%arg0: i32, %arg1: i32, %arg2: memref<1x4x768xf32, #tpu.memory_space<vmem>>, %arg3: memref<768x32xbf16, #tpu.memory_space<vmem>>, %arg4: memref<5x32xf32, #tpu.memory_space<vmem>>, %arg5: memref<1x4x32xf32, #tpu.memory_space<vmem>>, %arg6: memref<1x32x128xbf16, #tpu.memory_space<vmem>>, %arg7: memref<1x1x128xf32, #tpu.memory_space<vmem>>, %arg8: memref<1x32x128xbf16, #tpu.memory_space<vmem>>, %arg9: memref<1x1x128xf32, #tpu.memory_space<vmem>>, %arg10: memref<1x128x32xbf16, #tpu.memory_space<vmem>>, %arg11: memref<1x1x32xf32, #tpu.memory_space<vmem>>, %arg12: memref<2x32xf32, #tpu.memory_space<vmem>>, %arg13: memref<32x4xbf16, #tpu.memory_space<vmem>>, %arg14: memref<1x4xf32, #tpu.memory_space<vmem>>, %arg15: memref<1x1x4xf32, #tpu.memory_space<vmem>>, %arg16: memref<5x32xf32, #tpu.memory_space<vmem>>) attributes {dimension_semantics = [#tpu.dimension_semantics<parallel>, #tpu.dimension_semantics<arbitrary>], iteration_bounds = array<i64: 2, 2>, scalar_prefetch = 0 : i64, scratch_operands = 1 : i64, tpu.core_type = #tpu.core_type<tc>, window_params = [{transform_indices = @transform_0, window_bounds = array<i64: 1, 4, 768>}, {pipeline_mode = #tpu.pipeline_mode<synchronous>, transform_indices = @transform_1, window_bounds = array<i64: 768, 32>}, {pipeline_mode = #tpu.pipeline_mode<synchronous>, transform_indices = @transform_2, window_bounds = array<i64: 5, 32>}, {transform_indices = @transform_3, window_bounds = array<i64: 1, 4, 32>}, {transform_indices = @transform_4, window_bounds = array<i64: 1, 32, 128>}, {transform_indices = @transform_5, window_bounds = array<i64: 1, 1, 128>}, {transform_indices = @transform_6, window_bounds = array<i64: 1, 32, 128>}, {transform_indices = @transform_7, window_bounds = array<i64: 1, 1, 128>}, {transform_indices = @transform_8, window_bounds = array<i64: 1, 128, 32>}, {transform_indices = @transform_9, window_bounds = array<i64: 1, 1, 32>}, {pipeline_mode = #tpu.pipeline_mode<synchronous>, transform_indices = @transform_10, window_bounds = array<i64: 2, 32>}, {pipeline_mode = #tpu.pipeline_mode<synchronous>, transform_indices = @transform_11, window_bounds = array<i64: 32, 4>}, {pipeline_mode = #tpu.pipeline_mode<synchronous>, transform_indices = @transform_12, window_bounds = array<i64: 1, 4>}, {transform_indices = @transform_13, window_bounds = array<i64: 1, 1, 4>}]} {
    %c0_i32 = arith.constant 0 : i32
    %0 = arith.cmpi eq, %arg1, %c0_i32 : i32
    %1 = arith.extui %0 : i1 to i32
    %c0_i32_0 = arith.constant 0 : i32
    %2 = arith.cmpi ne, %1, %c0_i32_0 : i32
    scf.if %2 {
      %c0_77 = arith.constant 0 : index
      %c0_78 = arith.constant 0 : index
      %c0_79 = arith.constant 0 : index
      %189 = vector.load %arg2[%c0_77, %c0_78, %c0_79] : memref<1x4x768xf32, #tpu.memory_space<vmem>>, vector<1x4x768xf32>
      %190 = vector.shape_cast %189 : vector<1x4x768xf32> to vector<4x768xf32>
      %191 = arith.truncf %190 : vector<4x768xf32> to vector<4x768xbf16>
      %c0_80 = arith.constant 0 : index
      %c0_81 = arith.constant 0 : index
      %192 = vector.load %arg3[%c0_80, %c0_81] : memref<768x32xbf16, #tpu.memory_space<vmem>>, vector<768x32xbf16>
      %cst_82 = arith.constant dense<0.000000e+00> : vector<4x32xf32>
      %193 = tpu.matmul %191, %192, %cst_82 {dimension_numbers = #tpu.dot_dimension_numbers<[1], [0], [0], [1], [0, 0, 1, 1], [], []>} : vector<4x768xbf16>, vector<768x32xbf16>, vector<4x32xf32> -> vector<4x32xf32>
      %cst_83 = arith.constant 0.000000e+00 : f32
      %194 = vector.broadcast %cst_83 : f32 to vector<1x32xf32>
      %195 = tpu.concatenate %194, %193 in 0 : vector<1x32xf32>, vector<4x32xf32> -> vector<5x32xf32>
      %c0_84 = arith.constant 0 : index
      %c0_85 = arith.constant 0 : index
      %196 = vector.load %arg4[%c0_84, %c0_85] : memref<5x32xf32, #tpu.memory_space<vmem>>, vector<5x32xf32>
      %197 = arith.addf %196, %195 : vector<5x32xf32>
      %c0_86 = arith.constant 0 : index
      %c0_87 = arith.constant 0 : index
      %198 = vector.load %arg16[%c0_86, %c0_87] : memref<5x32xf32, #tpu.memory_space<vmem>>, vector<5x32xf32>
      tpu.vector_store %arg16[%c0_86, %c0_87], %197 {strides = array<i32>} : memref<5x32xf32, #tpu.memory_space<vmem>>, vector<5x32xf32>,
    } else {
    }
    %c0 = arith.constant 0 : index
    %c0_1 = arith.constant 0 : index
    %c0_2 = arith.constant 0 : index
    %3 = vector.load %arg5[%c0, %c0_1, %c0_2] : memref<1x4x32xf32, #tpu.memory_space<vmem>>, vector<1x4x32xf32>
    %4 = vector.shape_cast %3 : vector<1x4x32xf32> to vector<4x32xf32>
    %c0_3 = arith.constant 0 : index
    %c0_4 = arith.constant 0 : index
    %5 = vector.load %arg16[%c0_3, %c0_4] : memref<5x32xf32, #tpu.memory_space<vmem>>, vector<5x32xf32>
    %6 = vector.extract_strided_slice %4 {offsets = [0, 0], sizes = [1, 32], strides = [1, 1]} : vector<4x32xf32> to vector<1x32xf32>
    %7 = vector.extract_strided_slice %4 {offsets = [1, 0], sizes = [1, 32], strides = [1, 1]} : vector<4x32xf32> to vector<1x32xf32>
    %cst = arith.constant dense<0.000000e+00> : vector<5xf32>
    %8 = vector.multi_reduction <add>, %5, %cst [1] : vector<5x32xf32> to vector<5xf32>
    %9 = vector.shape_cast %8 : vector<5xf32> to vector<5x1xf32>
    %cst_5 = arith.constant 3.200000e+01 : f32
    %10 = vector.broadcast %cst_5 : f32 to vector<5x1xf32>
    %11 = arith.divf %9, %10 : vector<5x1xf32>
    %12 = vector.broadcast %11 : vector<5x1xf32> to vector<5x32xf32>
    %13 = arith.subf %5, %12 : vector<5x32xf32>
    %14 = arith.mulf %13, %13 : vector<5x32xf32>
    %cst_6 = arith.constant dense<0.000000e+00> : vector<5xf32>
    %15 = vector.multi_reduction <add>, %14, %cst_6 [1] : vector<5x32xf32> to vector<5xf32>
    %16 = vector.shape_cast %15 : vector<5xf32> to vector<5x1xf32>
    %cst_7 = arith.constant 3.200000e+01 : f32
    %17 = vector.broadcast %cst_7 : f32 to vector<5x1xf32>
    %18 = arith.divf %16, %17 : vector<5x1xf32>
    %19 = vector.broadcast %11 : vector<5x1xf32> to vector<5x32xf32>
    %20 = arith.subf %5, %19 : vector<5x32xf32>
    %cst_8 = arith.constant 9.99999996E-13 : f32
    %21 = vector.broadcast %cst_8 : f32 to vector<5x1xf32>
    %22 = arith.addf %18, %21 : vector<5x1xf32>
    %23 = math.rsqrt %22 : vector<5x1xf32>
    %24 = vector.broadcast %23 : vector<5x1xf32> to vector<5x32xf32>
    %25 = arith.mulf %20, %24 : vector<5x32xf32>
    %26 = vector.broadcast %6 : vector<1x32xf32> to vector<5x32xf32>
    %27 = arith.mulf %25, %26 : vector<5x32xf32>
    %28 = vector.broadcast %7 : vector<1x32xf32> to vector<5x32xf32>
    %29 = arith.addf %27, %28 : vector<5x32xf32>
    %30 = arith.truncf %29 : vector<5x32xf32> to vector<5x32xbf16>
    %c0_9 = arith.constant 0 : index
    %c0_10 = arith.constant 0 : index
    %c0_11 = arith.constant 0 : index
    %31 = vector.load %arg6[%c0_9, %c0_10, %c0_11] : memref<1x32x128xbf16, #tpu.memory_space<vmem>>, vector<1x32x96xbf16>
    %32 = vector.shape_cast %31 : vector<1x32x96xbf16> to vector<32x96xbf16>
    %cst_12 = arith.constant dense<0.000000e+00> : vector<5x96xf32>
    %33 = tpu.matmul %30, %32, %cst_12 {dimension_numbers = #tpu.dot_dimension_numbers<[1], [0], [0], [1], [0, 0, 1, 1], [], []>} : vector<5x32xbf16>, vector<32x96xbf16>, vector<5x96xf32> -> vector<5x96xf32>
    %c0_13 = arith.constant 0 : index
    %c0_14 = arith.constant 0 : index
    %c0_15 = arith.constant 0 : index
    %34 = vector.load %arg7[%c0_13, %c0_14, %c0_15] : memref<1x1x128xf32, #tpu.memory_space<vmem>>, vector<1x1x96xf32>
    %35 = vector.shape_cast %34 : vector<1x1x96xf32> to vector<1x96xf32>
    %36 = vector.broadcast %35 : vector<1x96xf32> to vector<5x96xf32>
    %37 = arith.addf %33, %36 : vector<5x96xf32>
    %cst_16 = arith.constant 0.000000e+00 : f32
    %38 = vector.broadcast %cst_16 : f32 to vector<5x32xf32>
    %39 = vector.extract_strided_slice %37 {offsets = [0, 0], sizes = [5, 24], strides = [1, 1]} : vector<5x96xf32> to vector<5x24xf32>
    %40 = vector.extract_strided_slice %39 {offsets = [0, 0], sizes = [5, 8], strides = [1, 1]} : vector<5x24xf32> to vector<5x8xf32>
    %41 = vector.extract_strided_slice %39 {offsets = [0, 8], sizes = [5, 8], strides = [1, 1]} : vector<5x24xf32> to vector<5x8xf32>
    %42 = vector.extract_strided_slice %39 {offsets = [0, 16], sizes = [5, 8], strides = [1, 1]} : vector<5x24xf32> to vector<5x8xf32>
    %cst_17 = arith.constant dense<0.000000e+00> : vector<5x5xf32>
    %43 = tpu.matmul %40, %41, %cst_17 {dimension_numbers = #tpu.dot_dimension_numbers<[1], [1], [0], [0], [0, 0, 1, 0], [], []>} : vector<5x8xf32>, vector<5x8xf32>, vector<5x5xf32> -> vector<5x5xf32>
    %cst_18 = arith.constant 0.353553385 : f32
    %44 = vector.broadcast %cst_18 : f32 to vector<5x5xf32>
    %45 = arith.mulf %43, %44 : vector<5x5xf32>
    %cst_19 = arith.constant dense<0xFF800000> : vector<5xf32>
    %46 = vector.multi_reduction <maximumf>, %45, %cst_19 [1] : vector<5x5xf32> to vector<5xf32>
    %47 = vector.shape_cast %46 : vector<5xf32> to vector<5x1xf32>
    %48 = vector.broadcast %47 : vector<5x1xf32> to vector<5x5xf32>
    %49 = arith.subf %45, %48 : vector<5x5xf32>
    %50 = math.exp %49 : vector<5x5xf32>
    %cst_20 = arith.constant dense<0.000000e+00> : vector<5xf32>
    %51 = vector.multi_reduction <add>, %50, %cst_20 [1] : vector<5x5xf32> to vector<5xf32>
    %52 = vector.shape_cast %51 : vector<5xf32> to vector<5x1xf32>
    %53 = tpu.reciprocal %52 {approx = true} : vector<5x1xf32> -> vector<5x1xf32>
    %54 = vector.broadcast %53 : vector<5x1xf32> to vector<5x5xf32>
    %55 = arith.mulf %50, %54 : vector<5x5xf32>
    %cst_21 = arith.constant dense<0.000000e+00> : vector<5x8xf32>
    %56 = tpu.matmul %55, %42, %cst_21 {dimension_numbers = #tpu.dot_dimension_numbers<[1], [0], [0], [1], [0, 0, 1, 1], [], []>} : vector<5x5xf32>, vector<5x8xf32>, vector<5x8xf32> -> vector<5x8xf32>
    %57 = arith.truncf %56 : vector<5x8xf32> to vector<5x8xbf16>
    %c0_22 = arith.constant 0 : index
    %c0_23 = arith.constant 0 : index
    %c96 = arith.constant 96 : index
    %58 = vector.load %arg6[%c0_22, %c0_23, %c96] : memref<1x32x128xbf16, #tpu.memory_space<vmem>>, vector<1x8x32xbf16>
    %59 = vector.shape_cast %58 : vector<1x8x32xbf16> to vector<8x32xbf16>
    %cst_24 = arith.constant dense<0.000000e+00> : vector<5x32xf32>
    %60 = tpu.matmul %57, %59, %cst_24 {dimension_numbers = #tpu.dot_dimension_numbers<[1], [0], [0], [1], [0, 0, 1, 1], [], []>} : vector<5x8xbf16>, vector<8x32xbf16>, vector<5x32xf32> -> vector<5x32xf32>
    %61 = arith.addf %38, %60 : vector<5x32xf32>
    %62 = vector.extract_strided_slice %37 {offsets = [0, 24], sizes = [5, 24], strides = [1, 1]} : vector<5x96xf32> to vector<5x24xf32>
    %63 = vector.extract_strided_slice %62 {offsets = [0, 0], sizes = [5, 8], strides = [1, 1]} : vector<5x24xf32> to vector<5x8xf32>
    %64 = vector.extract_strided_slice %62 {offsets = [0, 8], sizes = [5, 8], strides = [1, 1]} : vector<5x24xf32> to vector<5x8xf32>
    %65 = vector.extract_strided_slice %62 {offsets = [0, 16], sizes = [5, 8], strides = [1, 1]} : vector<5x24xf32> to vector<5x8xf32>
    %cst_25 = arith.constant dense<0.000000e+00> : vector<5x5xf32>
    %66 = tpu.matmul %63, %64, %cst_25 {dimension_numbers = #tpu.dot_dimension_numbers<[1], [1], [0], [0], [0, 0, 1, 0], [], []>} : vector<5x8xf32>, vector<5x8xf32>, vector<5x5xf32> -> vector<5x5xf32>
    %cst_26 = arith.constant 0.353553385 : f32
    %67 = vector.broadcast %cst_26 : f32 to vector<5x5xf32>
    %68 = arith.mulf %66, %67 : vector<5x5xf32>
    %cst_27 = arith.constant dense<0xFF800000> : vector<5xf32>
    %69 = vector.multi_reduction <maximumf>, %68, %cst_27 [1] : vector<5x5xf32> to vector<5xf32>
    %70 = vector.shape_cast %69 : vector<5xf32> to vector<5x1xf32>
    %71 = vector.broadcast %70 : vector<5x1xf32> to vector<5x5xf32>
    %72 = arith.subf %68, %71 : vector<5x5xf32>
    %73 = math.exp %72 : vector<5x5xf32>
    %cst_28 = arith.constant dense<0.000000e+00> : vector<5xf32>
    %74 = vector.multi_reduction <add>, %73, %cst_28 [1] : vector<5x5xf32> to vector<5xf32>
    %75 = vector.shape_cast %74 : vector<5xf32> to vector<5x1xf32>
    %76 = tpu.reciprocal %75 {approx = true} : vector<5x1xf32> -> vector<5x1xf32>
    %77 = vector.broadcast %76 : vector<5x1xf32> to vector<5x5xf32>
    %78 = arith.mulf %73, %77 : vector<5x5xf32>
    %cst_29 = arith.constant dense<0.000000e+00> : vector<5x8xf32>
    %79 = tpu.matmul %78, %65, %cst_29 {dimension_numbers = #tpu.dot_dimension_numbers<[1], [0], [0], [1], [0, 0, 1, 1], [], []>} : vector<5x5xf32>, vector<5x8xf32>, vector<5x8xf32> -> vector<5x8xf32>
    %80 = arith.truncf %79 : vector<5x8xf32> to vector<5x8xbf16>
    %c0_30 = arith.constant 0 : index
    %c8 = arith.constant 8 : index
    %c96_31 = arith.constant 96 : index
    %81 = vector.load %arg6[%c0_30, %c8, %c96_31] : memref<1x32x128xbf16, #tpu.memory_space<vmem>>, vector<1x8x32xbf16>
    %82 = vector.shape_cast %81 : vector<1x8x32xbf16> to vector<8x32xbf16>
    %cst_32 = arith.constant dense<0.000000e+00> : vector<5x32xf32>
    %83 = tpu.matmul %80, %82, %cst_32 {dimension_numbers = #tpu.dot_dimension_numbers<[1], [0], [0], [1], [0, 0, 1, 1], [], []>} : vector<5x8xbf16>, vector<8x32xbf16>, vector<5x32xf32> -> vector<5x32xf32>
    %84 = arith.addf %61, %83 : vector<5x32xf32>
    %85 = vector.extract_strided_slice %37 {offsets = [0, 48], sizes = [5, 24], strides = [1, 1]} : vector<5x96xf32> to vector<5x24xf32>
    %86 = vector.extract_strided_slice %85 {offsets = [0, 0], sizes = [5, 8], strides = [1, 1]} : vector<5x24xf32> to vector<5x8xf32>
    %87 = vector.extract_strided_slice %85 {offsets = [0, 8], sizes = [5, 8], strides = [1, 1]} : vector<5x24xf32> to vector<5x8xf32>
    %88 = vector.extract_strided_slice %85 {offsets = [0, 16], sizes = [5, 8], strides = [1, 1]} : vector<5x24xf32> to vector<5x8xf32>
    %cst_33 = arith.constant dense<0.000000e+00> : vector<5x5xf32>
    %89 = tpu.matmul %86, %87, %cst_33 {dimension_numbers = #tpu.dot_dimension_numbers<[1], [1], [0], [0], [0, 0, 1, 0], [], []>} : vector<5x8xf32>, vector<5x8xf32>, vector<5x5xf32> -> vector<5x5xf32>
    %cst_34 = arith.constant 0.353553385 : f32
    %90 = vector.broadcast %cst_34 : f32 to vector<5x5xf32>
    %91 = arith.mulf %89, %90 : vector<5x5xf32>
    %cst_35 = arith.constant dense<0xFF800000> : vector<5xf32>
    %92 = vector.multi_reduction <maximumf>, %91, %cst_35 [1] : vector<5x5xf32> to vector<5xf32>
    %93 = vector.shape_cast %92 : vector<5xf32> to vector<5x1xf32>
    %94 = vector.broadcast %93 : vector<5x1xf32> to vector<5x5xf32>
    %95 = arith.subf %91, %94 : vector<5x5xf32>
    %96 = math.exp %95 : vector<5x5xf32>
    %cst_36 = arith.constant dense<0.000000e+00> : vector<5xf32>
    %97 = vector.multi_reduction <add>, %96, %cst_36 [1] : vector<5x5xf32> to vector<5xf32>
    %98 = vector.shape_cast %97 : vector<5xf32> to vector<5x1xf32>
    %99 = tpu.reciprocal %98 {approx = true} : vector<5x1xf32> -> vector<5x1xf32>
    %100 = vector.broadcast %99 : vector<5x1xf32> to vector<5x5xf32>
    %101 = arith.mulf %96, %100 : vector<5x5xf32>
    %cst_37 = arith.constant dense<0.000000e+00> : vector<5x8xf32>
    %102 = tpu.matmul %101, %88, %cst_37 {dimension_numbers = #tpu.dot_dimension_numbers<[1], [0], [0], [1], [0, 0, 1, 1], [], []>} : vector<5x5xf32>, vector<5x8xf32>, vector<5x8xf32> -> vector<5x8xf32>
    %103 = arith.truncf %102 : vector<5x8xf32> to vector<5x8xbf16>
    %c0_38 = arith.constant 0 : index
    %c16 = arith.constant 16 : index
    %c96_39 = arith.constant 96 : index
    %104 = vector.load %arg6[%c0_38, %c16, %c96_39] : memref<1x32x128xbf16, #tpu.memory_space<vmem>>, vector<1x8x32xbf16>
    %105 = vector.shape_cast %104 : vector<1x8x32xbf16> to vector<8x32xbf16>
    %cst_40 = arith.constant dense<0.000000e+00> : vector<5x32xf32>
    %106 = tpu.matmul %103, %105, %cst_40 {dimension_numbers = #tpu.dot_dimension_numbers<[1], [0], [0], [1], [0, 0, 1, 1], [], []>} : vector<5x8xbf16>, vector<8x32xbf16>, vector<5x32xf32> -> vector<5x32xf32>
    %107 = arith.addf %84, %106 : vector<5x32xf32>
    %108 = vector.extract_strided_slice %37 {offsets = [0, 72], sizes = [5, 24], strides = [1, 1]} : vector<5x96xf32> to vector<5x24xf32>
    %109 = vector.extract_strided_slice %108 {offsets = [0, 0], sizes = [5, 8], strides = [1, 1]} : vector<5x24xf32> to vector<5x8xf32>
    %110 = vector.extract_strided_slice %108 {offsets = [0, 8], sizes = [5, 8], strides = [1, 1]} : vector<5x24xf32> to vector<5x8xf32>
    %111 = vector.extract_strided_slice %108 {offsets = [0, 16], sizes = [5, 8], strides = [1, 1]} : vector<5x24xf32> to vector<5x8xf32>
    %cst_41 = arith.constant dense<0.000000e+00> : vector<5x5xf32>
    %112 = tpu.matmul %109, %110, %cst_41 {dimension_numbers = #tpu.dot_dimension_numbers<[1], [1], [0], [0], [0, 0, 1, 0], [], []>} : vector<5x8xf32>, vector<5x8xf32>, vector<5x5xf32> -> vector<5x5xf32>
    %cst_42 = arith.constant 0.353553385 : f32
    %113 = vector.broadcast %cst_42 : f32 to vector<5x5xf32>
    %114 = arith.mulf %112, %113 : vector<5x5xf32>
    %cst_43 = arith.constant dense<0xFF800000> : vector<5xf32>
    %115 = vector.multi_reduction <maximumf>, %114, %cst_43 [1] : vector<5x5xf32> to vector<5xf32>
    %116 = vector.shape_cast %115 : vector<5xf32> to vector<5x1xf32>
    %117 = vector.broadcast %116 : vector<5x1xf32> to vector<5x5xf32>
    %118 = arith.subf %114, %117 : vector<5x5xf32>
    %119 = math.exp %118 : vector<5x5xf32>
    %cst_44 = arith.constant dense<0.000000e+00> : vector<5xf32>
    %120 = vector.multi_reduction <add>, %119, %cst_44 [1] : vector<5x5xf32> to vector<5xf32>
    %121 = vector.shape_cast %120 : vector<5xf32> to vector<5x1xf32>
    %122 = tpu.reciprocal %121 {approx = true} : vector<5x1xf32> -> vector<5x1xf32>
    %123 = vector.broadcast %122 : vector<5x1xf32> to vector<5x5xf32>
    %124 = arith.mulf %119, %123 : vector<5x5xf32>
    %cst_45 = arith.constant dense<0.000000e+00> : vector<5x8xf32>
    %125 = tpu.matmul %124, %111, %cst_45 {dimension_numbers = #tpu.dot_dimension_numbers<[1], [0], [0], [1], [0, 0, 1, 1], [], []>} : vector<5x5xf32>, vector<5x8xf32>, vector<5x8xf32> -> vector<5x8xf32>
    %126 = arith.truncf %125 : vector<5x8xf32> to vector<5x8xbf16>
    %c0_46 = arith.constant 0 : index
    %c24 = arith.constant 24 : index
    %c96_47 = arith.constant 96 : index
    %127 = vector.load %arg6[%c0_46, %c24, %c96_47] : memref<1x32x128xbf16, #tpu.memory_space<vmem>>, vector<1x8x32xbf16>
    %128 = vector.shape_cast %127 : vector<1x8x32xbf16> to vector<8x32xbf16>
    %cst_48 = arith.constant dense<0.000000e+00> : vector<5x32xf32>
    %129 = tpu.matmul %126, %128, %cst_48 {dimension_numbers = #tpu.dot_dimension_numbers<[1], [0], [0], [1], [0, 0, 1, 1], [], []>} : vector<5x8xbf16>, vector<8x32xbf16>, vector<5x32xf32> -> vector<5x32xf32>
    %130 = arith.addf %107, %129 : vector<5x32xf32>
    %131 = arith.addf %5, %130 : vector<5x32xf32>
    %c0_49 = arith.constant 0 : index
    %c0_50 = arith.constant 0 : index
    %c96_51 = arith.constant 96 : index
    %132 = vector.load %arg7[%c0_49, %c0_50, %c96_51] : memref<1x1x128xf32, #tpu.memory_space<vmem>>, vector<1x1x32xf32>
    %133 = vector.shape_cast %132 : vector<1x1x32xf32> to vector<1x32xf32>
    %134 = vector.broadcast %133 : vector<1x32xf32> to vector<5x32xf32>
    %135 = arith.addf %131, %134 : vector<5x32xf32>
    %136 = vector.extract_strided_slice %4 {offsets = [2, 0], sizes = [1, 32], strides = [1, 1]} : vector<4x32xf32> to vector<1x32xf32>
    %137 = vector.extract_strided_slice %4 {offsets = [3, 0], sizes = [1, 32], strides = [1, 1]} : vector<4x32xf32> to vector<1x32xf32>
    %cst_52 = arith.constant dense<0.000000e+00> : vector<5xf32>
    %138 = vector.multi_reduction <add>, %135, %cst_52 [1] : vector<5x32xf32> to vector<5xf32>
    %139 = vector.shape_cast %138 : vector<5xf32> to vector<5x1xf32>
    %cst_53 = arith.constant 3.200000e+01 : f32
    %140 = vector.broadcast %cst_53 : f32 to vector<5x1xf32>
    %141 = arith.divf %139, %140 : vector<5x1xf32>
    %142 = vector.broadcast %141 : vector<5x1xf32> to vector<5x32xf32>
    %143 = arith.subf %135, %142 : vector<5x32xf32>
    %144 = arith.mulf %143, %143 : vector<5x32xf32>
    %cst_54 = arith.constant dense<0.000000e+00> : vector<5xf32>
    %145 = vector.multi_reduction <add>, %144, %cst_54 [1] : vector<5x32xf32> to vector<5xf32>
    %146 = vector.shape_cast %145 : vector<5xf32> to vector<5x1xf32>
    %cst_55 = arith.constant 3.200000e+01 : f32
    %147 = vector.broadcast %cst_55 : f32 to vector<5x1xf32>
    %148 = arith.divf %146, %147 : vector<5x1xf32>
    %149 = vector.broadcast %141 : vector<5x1xf32> to vector<5x32xf32>
    %150 = arith.subf %135, %149 : vector<5x32xf32>
    %cst_56 = arith.constant 9.99999996E-13 : f32
    %151 = vector.broadcast %cst_56 : f32 to vector<5x1xf32>
    %152 = arith.addf %148, %151 : vector<5x1xf32>
    %153 = math.rsqrt %152 : vector<5x1xf32>
    %154 = vector.broadcast %153 : vector<5x1xf32> to vector<5x32xf32>
    %155 = arith.mulf %150, %154 : vector<5x32xf32>
    %156 = vector.broadcast %136 : vector<1x32xf32> to vector<5x32xf32>
    %157 = arith.mulf %155, %156 : vector<5x32xf32>
    %158 = vector.broadcast %137 : vector<1x32xf32> to vector<5x32xf32>
    %159 = arith.addf %157, %158 : vector<5x32xf32>
    %160 = arith.truncf %159 : vector<5x32xf32> to vector<5x32xbf16>
    %c0_57 = arith.constant 0 : index
    %c0_58 = arith.constant 0 : index
    %c0_59 = arith.constant 0 : index
    %161 = vector.load %arg8[%c0_57, %c0_58, %c0_59] : memref<1x32x128xbf16, #tpu.memory_space<vmem>>, vector<1x32x128xbf16>
    %162 = vector.shape_cast %161 : vector<1x32x128xbf16> to vector<32x128xbf16>
    %cst_60 = arith.constant dense<0.000000e+00> : vector<5x128xf32>
    %163 = tpu.matmul %160, %162, %cst_60 {dimension_numbers = #tpu.dot_dimension_numbers<[1], [0], [0], [1], [0, 0, 1, 1], [], []>} : vector<5x32xbf16>, vector<32x128xbf16>, vector<5x128xf32> -> vector<5x128xf32>
    %c0_61 = arith.constant 0 : index
    %c0_62 = arith.constant 0 : index
    %c0_63 = arith.constant 0 : index
    %164 = vector.load %arg9[%c0_61, %c0_62, %c0_63] : memref<1x1x128xf32, #tpu.memory_space<vmem>>, vector<1x1x128xf32>
    %165 = vector.shape_cast %164 : vector<1x1x128xf32> to vector<1x128xf32>
    %166 = vector.broadcast %165 : vector<1x128xf32> to vector<5x128xf32>
    %167 = arith.addf %163, %166 : vector<5x128xf32>
    %cst_64 = arith.constant 5.000000e-01 : f32
    %168 = vector.broadcast %cst_64 : f32 to vector<5x128xf32>
    %169 = arith.mulf %168, %167 : vector<5x128xf32>
    %cst_65 = arith.constant 0.707106769 : f32
    %170 = vector.broadcast %cst_65 : f32 to vector<5x128xf32>
    %171 = arith.mulf %167, %170 : vector<5x128xf32>
    %172 = math.erf %171 : vector<5x128xf32>
    %cst_66 = arith.constant 1.000000e+00 : f32
    %173 = vector.broadcast %cst_66 : f32 to vector<5x128xf32>
    %174 = arith.addf %173, %172 : vector<5x128xf32>
    %175 = arith.mulf %169, %174 : vector<5x128xf32>
    %176 = arith.truncf %175 : vector<5x128xf32> to vector<5x128xbf16>
    %c0_67 = arith.constant 0 : index
    %c0_68 = arith.constant 0 : index
    %c0_69 = arith.constant 0 : index
    %177 = vector.load %arg10[%c0_67, %c0_68, %c0_69] : memref<1x128x32xbf16, #tpu.memory_space<vmem>>, vector<1x128x32xbf16>
    %178 = vector.shape_cast %177 : vector<1x128x32xbf16> to vector<128x32xbf16>
    %cst_70 = arith.constant dense<0.000000e+00> : vector<5x32xf32>
    %179 = tpu.matmul %176, %178, %cst_70 {dimension_numbers = #tpu.dot_dimension_numbers<[1], [0], [0], [1], [0, 0, 1, 1], [], []>} : vector<5x128xbf16>, vector<128x32xbf16>, vector<5x32xf32> -> vector<5x32xf32>
    %c0_71 = arith.constant 0 : index
    %c0_72 = arith.constant 0 : index
    %c0_73 = arith.constant 0 : index
    %180 = vector.load %arg11[%c0_71, %c0_72, %c0_73] : memref<1x1x32xf32, #tpu.memory_space<vmem>>, vector<1x1x32xf32>
    %181 = vector.shape_cast %180 : vector<1x1x32xf32> to vector<1x32xf32>
    %182 = vector.broadcast %181 : vector<1x32xf32> to vector<5x32xf32>
    %183 = arith.addf %179, %182 : vector<5x32xf32>
    %184 = arith.addf %135, %183 : vector<5x32xf32>
    %c0_74 = arith.constant 0 : index
    %c0_75 = arith.constant 0 : index
    %185 = vector.load %arg16[%c0_74, %c0_75] : memref<5x32xf32, #tpu.memory_space<vmem>>, vector<5x32xf32>
    tpu.vector_store %arg16[%c0_74, %c0_75], %184 {strides = array<i32>} : memref<5x32xf32, #tpu.memory_space<vmem>>, vector<5x32xf32>,
    %c1_i32 = arith.constant 1 : i32
    %186 = arith.cmpi eq, %arg1, %c1_i32 : i32
    %187 = arith.extui %186 : i1 to i32
    %c0_i32_76 = arith.constant 0 : i32
    %188 = arith.cmpi ne, %187, %c0_i32_76 : i32
    scf.if %188 {
      %189 = vector.extract_strided_slice %184 {offsets = [0, 0], sizes = [1, 32], strides = [1, 1]} : vector<5x32xf32> to vector<1x32xf32>
      %c0_77 = arith.constant 0 : index
      %c0_78 = arith.constant 0 : index
      %190 = vector.load %arg12[%c0_77, %c0_78] : memref<2x32xf32, #tpu.memory_space<vmem>>, vector<1x32xf32>
      %c1 = arith.constant 1 : index
      %c0_79 = arith.constant 0 : index
      %191 = vector.load %arg12[%c1, %c0_79] : memref<2x32xf32, #tpu.memory_space<vmem>>, vector<1x32xf32>
      %cst_80 = arith.constant dense<0.000000e+00> : vector<1xf32>
      %192 = vector.multi_reduction <add>, %189, %cst_80 [1] : vector<1x32xf32> to vector<1xf32>
      %193 = vector.shape_cast %192 : vector<1xf32> to vector<1x1xf32>
      %cst_81 = arith.constant 3.200000e+01 : f32
      %194 = vector.broadcast %cst_81 : f32 to vector<1x1xf32>
      %195 = arith.divf %193, %194 : vector<1x1xf32>
      %196 = vector.broadcast %195 : vector<1x1xf32> to vector<1x32xf32>
      %197 = arith.subf %189, %196 : vector<1x32xf32>
      %198 = arith.mulf %197, %197 : vector<1x32xf32>
      %cst_82 = arith.constant dense<0.000000e+00> : vector<1xf32>
      %199 = vector.multi_reduction <add>, %198, %cst_82 [1] : vector<1x32xf32> to vector<1xf32>
      %200 = vector.shape_cast %199 : vector<1xf32> to vector<1x1xf32>
      %cst_83 = arith.constant 3.200000e+01 : f32
      %201 = vector.broadcast %cst_83 : f32 to vector<1x1xf32>
      %202 = arith.divf %200, %201 : vector<1x1xf32>
      %203 = vector.broadcast %195 : vector<1x1xf32> to vector<1x32xf32>
      %204 = arith.subf %189, %203 : vector<1x32xf32>
      %cst_84 = arith.constant 9.99999996E-13 : f32
      %205 = vector.broadcast %cst_84 : f32 to vector<1x1xf32>
      %206 = arith.addf %202, %205 : vector<1x1xf32>
      %207 = math.rsqrt %206 : vector<1x1xf32>
      %208 = vector.broadcast %207 : vector<1x1xf32> to vector<1x32xf32>
      %209 = arith.mulf %204, %208 : vector<1x32xf32>
      %210 = arith.mulf %209, %190 : vector<1x32xf32>
      %211 = arith.addf %210, %191 : vector<1x32xf32>
      %212 = arith.truncf %211 : vector<1x32xf32> to vector<1x32xbf16>
      %c0_85 = arith.constant 0 : index
      %c0_86 = arith.constant 0 : index
      %213 = vector.load %arg13[%c0_85, %c0_86] : memref<32x4xbf16, #tpu.memory_space<vmem>>, vector<32x4xbf16>
      %cst_87 = arith.constant dense<0.000000e+00> : vector<1x4xf32>
      %214 = tpu.matmul %212, %213, %cst_87 {dimension_numbers = #tpu.dot_dimension_numbers<[1], [0], [0], [1], [0, 0, 1, 1], [], []>} : vector<1x32xbf16>, vector<32x4xbf16>, vector<1x4xf32> -> vector<1x4xf32>
      %c0_88 = arith.constant 0 : index
      %c0_89 = arith.constant 0 : index
      %215 = vector.load %arg14[%c0_88, %c0_89] : memref<1x4xf32, #tpu.memory_space<vmem>>, vector<1x4xf32>
      %216 = arith.addf %214, %215 : vector<1x4xf32>
      %c0_90 = arith.constant 0 : index
      %c0_91 = arith.constant 0 : index
      %c0_92 = arith.constant 0 : index
      %217 = vector.load %arg15[%c0_90, %c0_91, %c0_92] : memref<1x1x4xf32, #tpu.memory_space<vmem>>, vector<1x1x4xf32>
      %218 = vector.shape_cast %217 : vector<1x1x4xf32> to vector<1x4xf32>
      %219 = vector.shape_cast %216 : vector<1x4xf32> to vector<1x1x4xf32>
      tpu.vector_store %arg15[%c0_90, %c0_91, %c0_92], %219 {strides = array<i32>} : memref<1x1x4xf32, #tpu.memory_space<vmem>>, vector<1x1x4xf32>,
    } else {
    }
    return
  }
  func.func @transform_0(%arg0: i32, %arg1: i32) -> (i32, i32, i32) {
    %c0_i32 = arith.constant 0 : i32
    %c0_i32_0 = arith.constant 0 : i32
    %c0_i32_1 = arith.constant 0 : i32
    return %arg0, %c0_i32, %c0_i32_0 : i32, i32, i32
  }
  func.func @transform_1(%arg0: i32, %arg1: i32) -> (i32, i32) {
    %c0_i32 = arith.constant 0 : i32
    %c0_i32_0 = arith.constant 0 : i32
    %c0_i32_1 = arith.constant 0 : i32
    return %c0_i32, %c0_i32_0 : i32, i32
  }
  func.func @transform_2(%arg0: i32, %arg1: i32) -> (i32, i32) {
    %c0_i32 = arith.constant 0 : i32
    %c0_i32_0 = arith.constant 0 : i32
    %c0_i32_1 = arith.constant 0 : i32
    return %c0_i32, %c0_i32_0 : i32, i32
  }
  func.func @transform_3(%arg0: i32, %arg1: i32) -> (i32, i32, i32) {
    %c0_i32 = arith.constant 0 : i32
    %c0_i32_0 = arith.constant 0 : i32
    %c0_i32_1 = arith.constant 0 : i32
    return %arg1, %c0_i32, %c0_i32_0 : i32, i32, i32
  }
  func.func @transform_4(%arg0: i32, %arg1: i32) -> (i32, i32, i32) {
    %c0_i32 = arith.constant 0 : i32
    %c0_i32_0 = arith.constant 0 : i32
    %c0_i32_1 = arith.constant 0 : i32
    return %arg1, %c0_i32, %c0_i32_0 : i32, i32, i32
  }
  func.func @transform_5(%arg0: i32, %arg1: i32) -> (i32, i32, i32) {
    %c0_i32 = arith.constant 0 : i32
    %c0_i32_0 = arith.constant 0 : i32
    %c0_i32_1 = arith.constant 0 : i32
    return %arg1, %c0_i32, %c0_i32_0 : i32, i32, i32
  }
  func.func @transform_6(%arg0: i32, %arg1: i32) -> (i32, i32, i32) {
    %c0_i32 = arith.constant 0 : i32
    %c0_i32_0 = arith.constant 0 : i32
    %c0_i32_1 = arith.constant 0 : i32
    return %arg1, %c0_i32, %c0_i32_0 : i32, i32, i32
  }
  func.func @transform_7(%arg0: i32, %arg1: i32) -> (i32, i32, i32) {
    %c0_i32 = arith.constant 0 : i32
    %c0_i32_0 = arith.constant 0 : i32
    %c0_i32_1 = arith.constant 0 : i32
    return %arg1, %c0_i32, %c0_i32_0 : i32, i32, i32
  }
  func.func @transform_8(%arg0: i32, %arg1: i32) -> (i32, i32, i32) {
    %c0_i32 = arith.constant 0 : i32
    %c0_i32_0 = arith.constant 0 : i32
    %c0_i32_1 = arith.constant 0 : i32
    return %arg1, %c0_i32, %c0_i32_0 : i32, i32, i32
  }
  func.func @transform_9(%arg0: i32, %arg1: i32) -> (i32, i32, i32) {
    %c0_i32 = arith.constant 0 : i32
    %c0_i32_0 = arith.constant 0 : i32
    %c0_i32_1 = arith.constant 0 : i32
    return %arg1, %c0_i32, %c0_i32_0 : i32, i32, i32
  }
  func.func @transform_10(%arg0: i32, %arg1: i32) -> (i32, i32) {
    %c0_i32 = arith.constant 0 : i32
    %c0_i32_0 = arith.constant 0 : i32
    %c0_i32_1 = arith.constant 0 : i32
    return %c0_i32, %c0_i32_0 : i32, i32
  }
  func.func @transform_11(%arg0: i32, %arg1: i32) -> (i32, i32) {
    %c0_i32 = arith.constant 0 : i32
    %c0_i32_0 = arith.constant 0 : i32
    %c0_i32_1 = arith.constant 0 : i32
    return %c0_i32, %c0_i32_0 : i32, i32
  }
  func.func @transform_12(%arg0: i32, %arg1: i32) -> (i32, i32) {
    %c0_i32 = arith.constant 0 : i32
    %c0_i32_0 = arith.constant 0 : i32
    %c0_i32_1 = arith.constant 0 : i32
    return %c0_i32, %c0_i32_0 : i32, i32
  }
  func.func @transform_13(%arg0: i32, %arg1: i32) -> (i32, i32, i32) {
    %c0_i32 = arith.constant 0 : i32
    %c0_i32_0 = arith.constant 0 : i32
    %c0_i32_1 = arith.constant 0 : i32
    return %arg0, %c0_i32, %c0_i32_0 : i32, i32, i32
  }
}

</mosaic_0001>

<bundles_post_ra>
// kernel: vit_forward.1
= control target key start
LH: loop header
LB: loop body
LE: loop exit
PB: predicated region body
PF: predicated region fallthrough
CT: control target
= control target key end

     0   :  { %s3044_s0 = inlined_call_operand.vmem [shape: f32[2,4,768], index: 0, kind: input, shape index: {}]   ;;  %s3045_s1 = inlined_call_operand.vmem [shape: bf16[768,32], index: 1, kind: input, shape index: {}]   ;;  %s3046_s2 = inlined_call_operand.vmem [shape: f32[5,32], index: 2, kind: input, shape index: {}]   ;;  %s3047_s3 = inlined_call_operand.vmem [shape: f32[2,4,32], index: 3, kind: input, shape index: {}]   ;;  %s3048_s4 = inlined_call_operand.vmem [shape: bf16[2,32,128], index: 4, kind: input, shape index: {}]   ;;  %s3049_s5 = inlined_call_operand.vmem [shape: f32[2,1,128], index: 5, kind: input, shape index: {}]   ;;  %s3050_s6 = inlined_call_operand.vmem [shape: bf16[2,32,128], index: 6, kind: input, shape index: {}]   ;;  %s3051_s7 = inlined_call_operand.vmem [shape: f32[2,1,128], index: 7, kind: input, shape index: {}]   ;;  %s3052_s8 = inlined_call_operand.vmem [shape: bf16[2,128,32], index: 8, kind: input, shape index: {}]   ;;  %s3053_s9 = inlined_call_operand.vmem [shape: f32[2,1,32], index: 9, kind: input, shape index: {}]   ;;  %s3054_s10 = inlined_call_operand.vmem [shape: f32[2,32], index: 10, kind: input, shape index: {}]   ;;  %s3055_s11 = inlined_call_operand.vmem [shape: bf16[32,4], index: 11, kind: input, shape index: {}]   ;;  %s3056_s12 = inlined_call_operand.vmem [shape: f32[1,4], index: 12, kind: input, shape index: {}]   ;;  %s3057_s13 = inlined_call_operand.hbm [shape: f32[2,1,4], index: 13, kind: output, shape index: {}]  }
   0x1   :  { %3071 = sst [smem:[#allocation17_spill]] %s3044_s0 }
   0x2   :  { %3072 = sst [smem:[#allocation18_spill]] %s3047_s3 }
   0x3   :  { %3073 = sst [smem:[#allocation19_spill]] %s3048_s4 }
   0x4   :  { %3074 = sst [smem:[#allocation20_spill]] %s3054_s10 }
   0x5   :  { %3075 = sst [smem:[#allocation21_spill]] %s3056_s12 }
   0x6   :  { %3076 = sst [smem:[#allocation22_spill]] %s3057_s13 }
   0x7   :  { %18 = vsyncpa [#allocation4], 0 }
   0x8   :  { %20 = vsyncpa [#allocation4 + $0x1], 0  ;;  %s2587_s25 = smov 0   ;;  %s2589_s26 = smov 0  }
   0x9   :  { %s2591_s27 = smov 0   ;;  %s2593_s28 = smov 0  }
   0xa   :  { %s2595_s29 = smov 0   ;;  %s2597_s30 = smov 0  }
   0xb   :  { %s2599_s14 = smov 0   ;;  %s2601_s15 = smov 0  }
   0xc LB: > { %3077 = sst [smem:[#allocation6_spill]] %s2474_s25  ;;  %s1940_s16 = sadd.s32 4294967295, %s2502_s15   ;;  %s2502_s15 = sphi %s2601_s15, %s26_s15   ;;  %s2498_s14 = sphi %s2599_s14, %s3108_s14   ;;  %s2494_s30 = sphi %s2597_s30, %s3107_s30   ;;  %s2490_s29 = sphi %s2595_s29, %s3106_s29   ;;  %s2486_s28 = sphi %s2593_s28, %s3105_s28   ;;  %s2482_s27 = sphi %s2591_s27, %s3104_s27   ;;  %s2478_s26 = sphi %s2589_s26, %s3110_s26   ;;  %s2474_s25 = sphi %s2587_s25, %s3109_s25  }
   0xd   : > { %3078 = sst [smem:[#allocation7_spill]] %s2482_s27  ;;  %s1941_s17 = sadd.s32 4294967294, %s2502_s15  }
   0xe   : > { %3079 = sst [smem:[#allocation8_spill]] %s2490_s29  ;;  %s35_s18 = sadd.s32 1, %s2494_s30 }
   0xf   : > { %3080 = sst [smem:[#allocation9_spill]] %s2494_s30  ;;  %p36_p0 = scmp.ge.s32.totalorder %s35_s18, 2 }
  0x10   : > { %3081 = sst [smem:[#allocation10_spill]] %s2498_s14  ;;  %s38_s19 = sadd.s32 1, %s2498_s14 }
  0x11   : > { %3082 = sst [smem:[#allocation11_spill]] %s2502_s15  ;;  %p368_p1 = scmp.ne.s32.totalorder %s2482_s27, %s2478_s26 }
  0x12   : > { %p369_p2 = scmp.eq.s32.totalorder %s1940_s16, 3  ;;  %s3112_s18 = smov (%p36_p0, %s35_s18), 0 }
  0x13   : > { %3083 = sst [smem:[#allocation12_spill]] %s3112_s18  ;;  %s3114_s19 = smov (!%p36_p0, %s38_s19), %s2498_s14 }
  0x14   : > { %p2636_p3 = por %p369_p2, %p368_p1  ;;  %p374_p4 = scmp.ne.s32.totalorder %s2478_s26, %s2474_s25 }
  0x15   : > { %p40_p5 = scmp.ge.s32.totalorder %s3114_s19, 2  ;;  %p375_p6 = scmp.eq.s32.totalorder %s1941_s17, 3 }
  0x16   : > { %s3084_s20 = scalar_select %p2636_p3, 1, 0 }
  0x17   : > { %p1944_p7 = scmp.ge.s32.totalorder %s2502_s15, 1  ;;  %p465_p8 = scmp.lt.s32.totalorder %s2502_s15, 5 }
  0x18   : > { %3085 = sst [smem:[#allocation13_spill]] %s3084_s20  ;;  %s3116_s19 = smov (%p40_p5, %s3114_s19), 0 }
  0x19   : > { %3086 = sst [smem:[#allocation14_spill]] %s3116_s19  ;;  %p2646_p9 = por %p375_p6, %p374_p4 }
  0x1a   : > { %p466_p10 = pnand %p1944_p7, %p465_p8  ;;  %s355_s22 = ssub.s32 %s2498_s14, %s3116_s19 }
  0x1b   : > { %s3087_s21 = scalar_select %p2646_p9, 1, 0 }
  0x1c   : > { %s358_s23 = sadd.s32 1, %s2482_s27  ;;  %p356_p11 = scmp.eq.s32.totalorder %s355_s22, 0 }
  0x1d   : > { %3088 = sst [smem:[#allocation15_spill]] %s3087_s21  ;;  %469 = sbr.rel (%p466_p10) target bundleno = 3358 (0xd1e), region = 72 }
  0x1e   : > { %s2654_s24 = scalar_select %p356_p11, %s2482_s27, %s358_s23  }
  0x1f   : > { %p536_p12 = scmp.lt.s32.totalorder (!%p466_p10), %s2490_s29, 1  ;;  %p541_p13 = scmp.lt.s32.totalorder (!%p466_p10), %s2486_s28, 1 }
  0x20   : > { %3089 = sst [smem:[#allocation16_spill]] %s2654_s24  ;;  %s3093_s13 = sand.u32 (!%p466_p10), 1, %s2478_s26  }
  0x21   : > { %s3090_s0 = sld [smem:[#allocation17_spill]] (!%p466_p10)  ;;  %p1953_p0 = scmp.ne.s32.totalorder (!%p466_p10), %s2486_s28, 0 }
  0x22   : > { %s537_s17 = scalar_select %p536_p12, %s2490_s29, 1 }
  0x23   : > { %s2661_s18 = scalar_select %p541_p13, %s2486_s28, 1 }
  0x24   : > { %s2294_s22 = smul.u32 24, %s537_s17  ;;  %s3091_s3 = sld [smem:[#allocation18_spill]] }
  0x25   : > { %s1946_s23 = sshll.u32 %s2661_s18, 2  ;;  %s2225_s19 = sshll.u32 %s2661_s18, 4 }
  0x26   : > { %s3092_s4 = sld [smem:[#allocation19_spill]]  ;;  %s552_s17 = scalar_lea.vmem %s3049_s5, %s2661_s18 }
  0x27   : > { %s2668_s24 = scalar_lea.vmem %s3090_s0, %s2294_s22  ;;  %s2687_s30 = scalar_lea.vmem %s3050_s6, %s2225_s19 }
  0x28   : > { %s560_s27 = scalar_lea.vmem %s3051_s7, %s2661_s18  ;;  %s2227_s16 = sshll.u32 %s2661_s18, 6 }
  0x29   : > { %s568_s25 = scalar_lea.vmem %s3053_s9, %s2661_s18  ;;  %s2705_s29 = scalar_lea.vmem [#allocation3], %s3093_s13 }
  0x2a   : > { %s2673_s21 = scalar_lea.vmem %s3091_s3, %s1946_s23  ;;  %573 = sbr.rel (%p1953_p0) target bundleno = 247 (0xf7), region = 76 }
  0x2c   : > { %s2678_s20 = scalar_lea.vmem %s3092_s4, %s2225_s19  ;;  %s2701_s4 = scalar_lea.vmem %s3052_s8, %s2227_s16 }
  0x2f   : > { %v2235_v0 = vld [vmem:[%s3045_s1 + $0x38] sm:$0xff]  ;;  %v2234_v2 = vld [vmem:[%s3045_s1 + $0x30] sm:$0xff]  ;;  %v2233_v8 = vld [vmem:[%s3045_s1 + $0x28] sm:$0xff]  ;;  %vm1068_vm0 = vcmask 1040384   ;;  %vm1072_vm1 = vcmask 258048  }
  0x30   : > { %v2243_v1 = vld [vmem:[%s3045_s1 + $0x78] sm:$0xff]  ;;  %987 = vmatpush.bf16.msra.mxu0 %v2235_v0  ;;  %v2242_v3 = vld [vmem:[%s3045_s1 + $0x70] sm:$0xff]  ;;  %v2241_v9 = vld [vmem:[%s3045_s1 + $0x68] sm:$0xff] }
  0x31   : > { %1000 = vmatpush.bf16.msra.mxu1 %v2243_v1  ;;  %v2251_v4 = vld [vmem:[%s3045_s1 + $0xb8] sm:$0xff]  ;;  %v2250_v6 = vld [vmem:[%s3045_s1 + $0xb0] sm:$0xff]  ;;  %v2249_v10 = vld [vmem:[%s3045_s1 + $0xa8] sm:$0xff] }
  0x32   : > { %v2259_v5 = vld [vmem:[%s3045_s1 + $0xf8] sm:$0xff]  ;;  %1013 = vmatpush.bf16.msra.mxu2 %v2251_v4  ;;  %v2258_v7 = vld [vmem:[%s3045_s1 + $0xf0] sm:$0xff]  ;;  %v2257_v11 = vld [vmem:[%s3045_s1 + $0xe8] sm:$0xff] }
  0x33   : > { %1026 = vmatpush.bf16.msra.mxu3 %v2259_v5  ;;  %v2232_v12 = vld [vmem:[%s3045_s1 + $0x20] sm:$0xff]  ;;  %v575_v17 = vld [vmem:[%s2668_s24 + $0x8] sm:$0xff]  ;;  %v2231_v18 = vld [vmem:[%s3045_s1 + $0x18] sm:$0xff] }
  0x34   : > { %988 = vmatpush.bf16.msra.mxu0 %v2234_v2  ;;  %v2240_v13 = vld [vmem:[%s3045_s1 + $0x60] sm:$0xff]  ;;  %v2239_v19 = vld [vmem:[%s3045_s1 + $0x58] sm:$0xff]  ;;  %582 = vst [vmem:[#allocation1 + $0x10] ss:$2 sm:$0xff] %v575_v17  ;;  %v2230_v22 = vld [vmem:[%s3045_s1 + $0x10] sm:$0xff] }
  0x35   : > { %1001 = vmatpush.bf16.msra.mxu1 %v2242_v3  ;;  %v574_v14 = vld [vmem:[%s2668_s24] sm:$0xff]  ;;  %v2247_v20 = vld [vmem:[%s3045_s1 + $0x98] sm:$0xff]  ;;  %v2238_v23 = vld [vmem:[%s3045_s1 + $0x50] sm:$0xff] }
  0x36   : > { %1014 = vmatpush.bf16.msra.mxu2 %v2250_v6  ;;  %v2248_v15 = vld [vmem:[%s3045_s1 + $0xa0] sm:$0xff]  ;;  %580 = vst [vmem:[#allocation1] ss:$2 sm:$0xff] %v574_v14  ;;  %v2255_v21 = vld [vmem:[%s3045_s1 + $0xd8] sm:$0xff]  ;;  %v2246_v24 = vld [vmem:[%s3045_s1 + $0x90] sm:$0xff] }
  0x37   : > { %1027 = vmatpush.bf16.msra.mxu3 %v2258_v7  ;;  %v2256_v16 = vld [vmem:[%s3045_s1 + $0xe0] sm:$0xff]  ;;  %v2254_v25 = vld [vmem:[%s3045_s1 + $0xd0] sm:$0xff]  ;;  %v2229_v27 = vld [vmem:[%s3045_s1 + $0x8] sm:$0xff] }
  0x38   : > { %989 = vmatpush.bf16.msra.mxu0 %v2233_v8  ;;  %v576_v26 = vld [vmem:[%s2668_s24 + $0x10] sm:$0xff]  ;;  %v2237_v28 = vld [vmem:[%s3045_s1 + $0x48] sm:$0xff]  ;;  %v2228_v31 = vld [vmem:[%s3045_s1] sm:$0xff] }
  0x39   : > { %1002 = vmatpush.bf16.msra.mxu1 %v2241_v9  ;;  %584 = vst [vmem:[#allocation1 + $0x20] ss:$2 sm:$0xff] %v576_v26  ;;  %v2245_v29 = vld [vmem:[%s3045_s1 + $0x88] sm:$0xff]  ;;  %v2236_v32 = vld [vmem:[%s3045_s1 + $0x40] sm:$0xff]  ;;  %v2267_v35 = vld [vmem:[%s3045_s1 + $0x138] sm:$0xff] }
  0x3a   : > { %1015 = vmatpush.bf16.msra.mxu2 %v2249_v10  ;;  %v2253_v30 = vld [vmem:[%s3045_s1 + $0xc8] sm:$0xff]  ;;  %v2275_v36 = vld [vmem:[%s3045_s1 + $0x178] sm:$0xff]  ;;  %v2244_v37 = vld [vmem:[%s3045_s1 + $0x80] sm:$0xff] }
  0x3b   : > { %1028 = vmatpush.bf16.msra.mxu3 %v2257_v11  ;;  %v2252_v38 = vld [vmem:[%s3045_s1 + $0xc0] sm:$0xff]  ;;  %v587_v41 = vld.sshfl [vmem:[#allocation1 + $0x10] sm:$0xff pattern:$0x75316420]  ;;  %v2265_v47 = vld [vmem:[%s3045_s1 + $0x128] sm:$0xff] }
  0x3c   : > { %990 = vmatpush.bf16.msra.mxu0 %v2232_v12  ;;  %v588_v42 = vld.sshfl [vmem:[#allocation1 + $0x18] sm:$0xff pattern:$0x75316420]  ;;  %v2266_v43 = vld [vmem:[%s3045_s1 + $0x130] sm:$0xff]  ;;  %v599_v45 = vpack.c.bf16 %v587_v41, %v587_v41  ;;  %v2273_v48 = vld [vmem:[%s3045_s1 + $0x168] sm:$0xff] }
  0x3d   : > { %1003 = vmatpush.bf16.msra.mxu1 %v2240_v13  ;;  %v585_v33 = vld.sshfl [vmem:[#allocation1] sm:$0xff pattern:$0x75316420]  ;;  %v586_v34 = vld.sshfl [vmem:[#allocation1 + $0x8] sm:$0xff pattern:$0x75316420]  ;;  %v600_v46 = vpack.c.bf16 %v588_v42, %v588_v42 }
  0x3e   : > { %1016 = vmatpush.bf16.msra.mxu2 %v2248_v15  ;;  %v597_v39 = vpack.c.bf16 %v585_v33, %v585_v33  ;;  %v598_v40 = vpack.c.bf16 %v586_v34, %v586_v34  ;;  %v2274_v44 = vld [vmem:[%s3045_s1 + $0x170] sm:$0xff]  ;;  %v2264_v49 = vld [vmem:[%s3045_s1 + $0x120] sm:$0xff]  ;;  %v2263_v51 = vld [vmem:[%s3045_s1 + $0x118] sm:$0xff] }
  0x3f   : > { %1029 = vmatpush.bf16.msra.mxu3 %v2256_v16  ;;  %v2272_v50 = vld [vmem:[%s3045_s1 + $0x160] sm:$0xff]  ;;  %v2271_v52 = vld [vmem:[%s3045_s1 + $0x158] sm:$0xff]  ;;  %v2262_v53 = vld [vmem:[%s3045_s1 + $0x110] sm:$0xff] }
  0x40   : > { %991 = vmatpush.bf16.msra.mxu0 %v2231_v18  ;;  %v2270_v54 = vld [vmem:[%s3045_s1 + $0x150] sm:$0xff]  ;;  %v2261_v55 = vld [vmem:[%s3045_s1 + $0x108] sm:$0xff]  ;;  %v2260_v57 = vld [vmem:[%s3045_s1 + $0x100] sm:$0xff] }
  0x41   : > { %1004 = vmatpush.bf16.msra.mxu1 %v2239_v19  ;;  %v2269_v56 = vld [vmem:[%s3045_s1 + $0x148] sm:$0xff]  ;;  %v2268_v58 = vld [vmem:[%s3045_s1 + $0x140] sm:$0xff] }
  0x42   : > { %1017 = vmatpush.bf16.msra.mxu2 %v2247_v20  ;;  %v589_v59 = vld.sshfl [vmem:[#allocation1 + $0x20] sm:$0xff pattern:$0x75316420]  ;;  %v590_v60 = vld.sshfl [vmem:[#allocation1 + $0x28] sm:$0xff pattern:$0x75316420] }
  0x43   : > { %1030 = vmatpush.bf16.msra.mxu3 %v2255_v21  ;;  %v601_v61 = vpack.c.bf16 %v589_v59, %v589_v59  ;;  %v602_v62 = vpack.c.bf16 %v590_v60, %v590_v60  ;;  %v1070_v15 = vld [vmem:[%s3046_s2] sm:$0x1f] }
  0x44   : > { %992 = vmatpush.bf16.msra.mxu0 %v2230_v22 }
  0x45   : > { %1005 = vmatpush.bf16.msra.mxu1 %v2238_v23 }
  0x46   : > { %1018 = vmatpush.bf16.msra.mxu2 %v2246_v24 }
  0x47   : > { %1031 = vmatpush.bf16.msra.mxu3 %v2254_v25 }
  0x48   : > { %993 = vmatpush.bf16.msra.mxu0 %v2229_v27 }
  0x49   : > { %1006 = vmatpush.bf16.msra.mxu1 %v2237_v28 }
  0x4a   : > { %1019 = vmatpush.bf16.msra.mxu2 %v2245_v29 }
  0x4b   : > { %1032 = vmatpush.bf16.msra.mxu3 %v2253_v30 }
  0x4c   : > { %994 = vmatpush.bf16.msra.mxu0 %v2228_v31 }
  0x4d   : > { %1007 = vmatpush.bf16.msra.mxu1 %v2236_v32 }
  0x4e   : > { %1020 = vmatpush.bf16.msra.mxu2 %v2244_v37 }
  0x4f   : > { %1033 = vmatpush.bf16.msra.mxu3 %v2252_v38  ;;  %995 = vmatmul.bf16.vlgmr.msra.gmra.mxu0 %v597_v39 }
  0x50   : > { %1039 = vmatpush.bf16.msrb.mxu0 %v2267_v35  ;;  %1008 = vmatmul.bf16.vlgmr.msra.gmra.mxu1 %v598_v40 }
  0x51   : > { %1052 = vmatpush.bf16.msrb.mxu1 %v2275_v36  ;;  %1021 = vmatmul.bf16.vlgmr.msra.gmra.mxu2 %v599_v45 }
  0x52   : > { %1034 = vmatmul.bf16.vlgmr.msra.gmra.mxu3 %v600_v46 }
  0x54   : > { %1040 = vmatpush.bf16.msrb.mxu0 %v2266_v43 }
  0x55   : > { %1053 = vmatpush.bf16.msrb.mxu1 %v2274_v44 }
  0x58   : > { %1041 = vmatpush.bf16.msrb.mxu0 %v2265_v47 }
  0x59   : > { %1054 = vmatpush.bf16.msrb.mxu1 %v2273_v48 }
  0x5c   : > { %1042 = vmatpush.bf16.msrb.mxu0 %v2264_v49 }
  0x5d   : > { %1055 = vmatpush.bf16.msrb.mxu1 %v2272_v50 }
  0x60   : > { %1043 = vmatpush.bf16.msrb.mxu0 %v2263_v51 }
  0x61   : > { %1056 = vmatpush.bf16.msrb.mxu1 %v2271_v52 }
  0x64   : > { %1044 = vmatpush.bf16.msrb.mxu0 %v2262_v53 }
  0x65   : > { %1057 = vmatpush.bf16.msrb.mxu1 %v2270_v54 }
  0x68   : > { %1045 = vmatpush.bf16.msrb.mxu0 %v2261_v55 }
  0x69   : > { %1058 = vmatpush.bf16.msrb.mxu1 %v2269_v56 }
  0x6c   : > { %1046 = vmatpush.bf16.msrb.mxu0 %v2260_v57 }
  0x6d   : > { %1059 = vmatpush.bf16.msrb.mxu1 %v2268_v58 }
  0x6f   : > { %1047 = vmatmul.bf16.vlgmr.msrb.gmra.mxu0 %v601_v61 }
  0x70   : > { %1060 = vmatmul.bf16.vlgmr.msrb.gmra.mxu1 %v602_v62 }
  0xcc   : > { %v996_v63 = vpop.f32.mrf.mxu0 }
  0xcd   : > { %v1009_v0 = vpop.f32.mrf.mxu1 }
  0xce   : > { %v1010_v7 = vadd.f32 %v1009_v0, %v996_v63 }
  0xd4   : > { %v998_v1 = vpop.f32.mrf.mxu0  ;;  %v1022_v3 = vpop.f32.mrf.mxu2 }
  0xd5   : > { %v1011_v2 = vpop.f32.mrf.mxu1  ;;  %v1035_v4 = vpop.f32.mrf.mxu3  ;;  %v1023_v8 = vadd.f32 %v1022_v3, %v1010_v7 }
  0xd7   : > { %v1036_v9 = vadd.f32 %v1035_v4, %v1023_v8 }
  0xdc   : > { %v1024_v5 = vpop.f32.mrf.mxu2 }
  0xdd   : > { %v1037_v6 = vpop.f32.mrf.mxu3 }
  0xec   : > { %v1048_v10 = vpop.f32.mrf.mxu0 }
  0xed   : > { %v1061_v11 = vpop.f32.mrf.mxu1  ;;  %v1049_v12 = vadd.f32 %v1048_v10, %v1036_v9 }
  0xef   : > { %v1062_v13 = vadd.f32 %v1061_v11, %v1049_v12 }
  0xf1   : > { %v1066_v14 = vrot.slane %v1062_v13, 7 }
  0xf3   : > { %v1069_v16 = vsel %vm1068_vm0, 0.0, %v1066_v14 }
  0xf4   : > { %v1071_v17 = vadd.f32 %v1070_v15, %v1069_v16  ;;  %v1050_v18 = vpop.f32.mrf.mxu0 }
  0xf5   : > { %v1063_v19 = vpop.f32.mrf.mxu1 }
  0xf6   : > { %1073 = vst.msk [vmem:[#allocation2] sm:$0x1f] %vm1072_vm1, %v1071_v17 }
  0xf7 PF: > { %vm1076_vm2 = vcmask 258048   ;;  %v2504_v22 = vmov 32.0   ;;  %v2868_v34 = vld [vmem:[%s2678_s20 + $0x8] sm:$0xff]   ;;  %v2276_v35 = vld [vmem:[%s2678_s20] sm:$0xff]  ;;  %vm1131_vm7 = vcmask 261120   ;;  %s2506_s23 = smov 112  }
  0xf8   : > { %2382 = vrcp.f32 %v2504_v22  ;;  %1141 = vmatpush.bf16.msra.mxu0 %v2868_v34  ;;  %v2874_v44 = vld [vmem:[%s2673_s21] sm:$0xf]  ;;  %s2505_s21 = smov 96   ;;  %s2507_s15 = smov 120   ;;  %vm1195_vm8 = vcmask 1044480   ;;  %vm1151_vm9 = vcmask 64512  }
  0xf9   : > { %v1106_v46 = vperm.slane %v2874_v44, 0  ;;  %v1108_v49 = vperm.slane %v2874_v44, 1  ;;  %v2884_v53 = vld [vmem:[%s552_s17] ss:$0 sm:$0xff]  ;;  %vm1177_vm10 = vcmask 36864   ;;  %s2508_s17 = smov 88  }
  0xfa   : > { %v1219_v63 = vld [vmem:[%s2678_s20] sm:$0xff]   ;;  %s2509_s13 = smov 32   ;;  %s2510_s10 = smov 80   ;;  %vm1297_vm11 = vcmask 1043456   ;;  %vm1191_vm12 = vcmask 39936  }
  0xfb   : > { %v1315_v0 = vunpack.c.l.b16 %v1219_v63  ;;  %s2511_s24 = smov 48   ;;  %s2512_s12 = smov 104   ;;  %v1290_v19 = vunpack.c.h.b16 %v1219_v63 }
  0xfc   : > { %1142 = vmatpush.bf16.msra.mxu0 %v2276_v35  ;;  %s2513_s19 = smov 56   ;;  %s2514_s14 = smov 72  }
  0xfd   : > { %v2858_v20 = vld [vmem:[#allocation2] sm:$0x1f]  ;;  %v1316_v1 = vpack.c.b16 %v1315_v0, %v1315_v0  ;;  %s2515_s0 = smov 40   ;;  %s2516_s22 = smov 64  }
  0xfe   : > { %v1077_v21 = vsel %vm1076_vm2, %v2858_v20, 0.0  ;;  %v2383_v23 = vpop.eup %2382  ;;  %p2213_p1 = scmp.ne.s32.totalorder %s2486_s28, 1 }
  0xff   : > { %1078 = vadd.xlane.f32.xlu0 %v1077_v21  ;;  %v1081_v24 = vmul.f32 32.0, %v2383_v23  ;;  %vm1085_vm3 = vweird.f32 %v2383_v23  ;;  %v1291_v21 = vpack.c.b16 %v1290_v19, %v1290_v19 }
 0x101   : > { %v1082_v25 = vsub.f32 1.0, %v1081_v24 }
 0x103   : > { %v1083_v26 = vmul.f32 %v2383_v23, %v1082_v25 }
 0x105   : > { %v1084_v27 = vadd.f32 %v2383_v23, %v1083_v26 }
 0x107   : > { %v2862_v28 = vsel %vm1085_vm3, %v2383_v23, %v1084_v27 }
 0x172   : > { %v1079_v29 = vpop.xlane.xlu0 %1078 }
 0x173   : > { %v1087_v30 = vmul.f32 %v2862_v28, %v1079_v29 }
 0x175   : > { %v1088_v31 = vsub.f32 %v2858_v20, %v1087_v30 }
 0x177   : > { %v1089_v32 = vmul.f32 %v1088_v31, %v1088_v31 }
 0x179   : > { %v1090_v33 = vsel %vm1076_vm2, %v1089_v32, 0.0 }
 0x17a   : > { %1091 = vadd.xlane.f32.xlu0 %v1090_v33 }
 0x1ed   : > { %v1092_v36 = vpop.xlane.xlu0 %1091 }
 0x1ee   : > { %v1093_v37 = vmul.f32 %v1092_v36, %v2862_v28 }
 0x1f0   : > { %v1094_v38 = vadd.f32 1e-12, %v1093_v37 }
 0x1f2   : > { %2384 = vrsqrt.f32 %v1094_v38  ;;  %vm1101_vm5 = vweird.f32 %v1094_v38 }
 0x1f8   : > { %v2385_v39 = vpop.eup %2384 }
 0x1f9   : > { %v1096_v40 = vmul.f32 %v2385_v39, %v1094_v38  ;;  %vm1102_vm4 = vweird.f32 %v2385_v39 }
 0x1fa   : > { %vm1103_vm6 = vmor %vm1101_vm5, %vm1102_vm4 }
 0x1fb   : > { %v1097_v41 = vmul.f32 %v2385_v39, %v1096_v40 }
 0x1fd   : > { %v1098_v42 = vmul.f32 0.5, %v1097_v41 }
 0x1ff   : > { %v1099_v43 = vsub.f32 1.5, %v1098_v42 }
 0x201   : > { %v1100_v45 = vmul.f32 %v2385_v39, %v1099_v43 }
 0x203   : > { %v1104_v47 = vsel %vm1103_vm6, %v2385_v39, %v1100_v45 }
 0x204   : > { %v1105_v48 = vmul.f32 %v1104_v47, %v1088_v31 }
 0x206   : > { %v1107_v50 = vmul.f32 %v1106_v46, %v1105_v48 }
 0x208   : > { %v1109_v51 = vadd.f32 %v1108_v49, %v1107_v50 }
 0x20a   : > { %v1110_v52 = vpack.c.bf16 %v1109_v51, %v1109_v51 }
 0x20c   : > { %2150 = vmatmul.msk.bf16.vlgmr.msra.gmra.mxu0 %vm1131_vm7, %v1110_v52 }
 0x289   : > { %v1144_v54 = vpop.f32.mrf.mxu0 }
 0x28a   : > { %v2887_v55 = vadd.f32 %v2884_v53, %v1144_v54 }
 0x28c   : > { %1222 = vrot.lane.b32.xlu0 %v2887_v55, %s2505_s21  ;;  %1189 = vrot.lane.b32.xlu2 %v2887_v55, %s2506_s23  ;;  %s3094_s23 = sld [smem:[#allocation20_spill]] (!%p2213_p1) }
 0x28d   : > { %1149 = vrot.lane.b32.xlu1 %v2887_v55, %s2507_s15 }
 0x291   : > { %v1146_v56 = vpop.f32.mrf.mxu0 }
 0x2e6   : > { %v1190_v57 = vpop.permute.xlu2 %1189 }
 0x2e7   : > { %2153 = vmatpush.msk.msra.mxu3 %vm1195_vm8, %v1190_v57 }
 0x2fe   : > { %v1223_v58 = vpop.permute.xlu0 %1222 }
 0x2ff   : > { %v1150_v59 = vpop.permute.xlu1 %1149  ;;  %2155 = vmatpush.xpose.msk.msrb.mxu3 %vm1151_vm9, %v1223_v58  ;;  %v2292_v58 = vunpack.c.h.b16 %v2868_v34 }
 0x300   : > { %2151 = vmatpush.xpose.msk.msra.mxu1 %vm1151_vm9, %v1150_v59 }
 0x301   : > { %v1500_v59 = vpack.c.b16 %v2292_v58, %v2292_v58  ;;  %v2380_v58 = vld [vmem:[%s560_s27] ss:$0 sm:$0xff] }
 0x303   : > { %2152 = vmatmul.msk.f32.vlgmr.msra.gmra.mxu1 %vm1151_vm9, %v2887_v55 }
 0x380   : > { %v1173_v60 = vpop.f32.mrf.mxu1 }
 0x381   : > { %v1176_v61 = vmul.f32 0.35355338, %v1173_v60 }
 0x383   : > { %v1178_v62 = vsel %vm1177_vm10, %v1176_v61, -inf }
 0x384   : > { %1179 = vmax.xlane.f32.xlu1 %v1178_v62 }
 0x39d   : > { %1260 = vrot.lane.b32.xlu1 %v2887_v55, %s2508_s17 }
 0x3a5   : > { %1317 = vrot.lane.b32.xlu1 %v1316_v1, %s2509_s13 }
 0x3ad   : > { %1338 = vrot.lane.b32.xlu1 %v2887_v55, %s2510_s10 }
 0x3b5   : > { %1434 = vrot.lane.b32.xlu1 %v2887_v55, %s2511_s24  ;;  %s3095_s24 = sld [smem:[#allocation21_spill]] (!%p2213_p1) }
 0x3f7   : > { %v1180_v2 = vpop.xlane.xlu1 %1179 }
 0x3f8   : > { %v1181_v3 = vsub.f32 %v1176_v61, %v1180_v2 }
 0x3fa   : > { %v1182_v4 = vmul.f32 1.442695, %v1181_v3 }
 0x3fc   : > { %2386 = vpow2.f32 %v1182_v4 }
 0x402   : > { %v2387_v5 = vpop.eup %2386 }
 0x403   : > { %v1184_v6 = vsel %vm1177_vm10, %v2387_v5, 0.0 }
 0x404   : > { %1185 = vadd.xlane.f32.xlu2 %v1184_v6 }
 0x40f   : > { %v1261_v7 = vpop.permute.xlu1 %1260 }
 0x410   : > { %2157 = vmatpush.msk.msrb.mxu0 %vm1195_vm8, %v1261_v7 }
 0x417   : > { %v1318_v10 = vpop.permute.xlu1 %1317 }
 0x418   : > { %v1323_v11 = vsel %vm1297_vm11, %v1318_v10, 0 }
 0x41c   : > { %1220 = vrot.lane.b32.xlu2 %v2887_v55, %s2512_s12 }
 0x41f   : > { %v1339_v27 = vpop.permute.xlu1 %1338 }
 0x427   : > { %v1435_v33 = vpop.permute.xlu1 %1434 }
 0x477   : > { %v1186_v8 = vpop.xlane.xlu2 %1185 }
 0x478   : > { %2388 = vrcp.f32 %v1186_v8 }
 0x47e   : > { %v2389_v9 = vpop.eup %2388 }
 0x47f   : > { %v1188_v12 = vmul.f32 %v2389_v9, %v2387_v5  ;;  %v1221_v13 = vpop.permute.xlu2 %1220 }
 0x481   : > { %2154 = vmatmul.msk.f32.vlgmr.msra.gmra.mxu3 %vm1191_vm12, %v1188_v12 }
 0x482   : > { %1332 = vmatpush.bf16.msra.mxu3 %v1323_v11 }
 0x489   : > { %2156 = vmatmul.msk.f32.vlgmr.msrb.gmra.mxu3 %vm1151_vm9, %v1221_v13 }
 0x504   : > { %v1215_v14 = vpop.f32.mrf.mxu3 }
 0x505   : > { %v1218_v15 = vpack.c.bf16 %v1215_v14, %v1215_v14 }
 0x507   : > { %2160 = vmatmul.msk.bf16.vlgmr.msra.gmra.mxu3 %vm1151_vm9, %v1218_v15 }
 0x50c   : > { %v1245_v16 = vpop.f32.mrf.mxu3 }
 0x50d   : > { %v1248_v17 = vmul.f32 0.35355338, %v1245_v16 }
 0x50f   : > { %v1249_v18 = vsel %vm1177_vm10, %v1248_v17, -inf }
 0x510   : > { %1250 = vmax.xlane.f32.xlu0 %v1249_v18 }
 0x524   : > { %1292 = vrot.lane.b32.xlu0 %v1291_v21, %s2509_s13 }
 0x52c   : > { %1432 = vrot.lane.b32.xlu0 %v2887_v55, %s2513_s19 }
 0x583   : > { %v1251_v22 = vpop.xlane.xlu0 %1250 }
 0x584   : > { %v1252_v23 = vsub.f32 %v1248_v17, %v1251_v22 }
 0x586   : > { %v1253_v24 = vmul.f32 1.442695, %v1252_v23 }
 0x588   : > { %2390 = vpow2.f32 %v1253_v24 }
 0x58a   : > { %v2913_v25 = vpop.f32.mrf.mxu3 }
 0x58e   : > { %v2391_v26 = vpop.eup %2390 }
 0x58f   : > { %v1255_v29 = vsel %vm1177_vm10, %v2391_v26, 0.0 }
 0x590   : > { %1256 = vadd.xlane.f32.xlu2 %v1255_v29 }
 0x592   : > { %v1336_v30 = vpop.f32.mrf.mxu3 }
 0x596   : > { %v1293_v31 = vpop.permute.xlu0 %1292 }
 0x597   : > { %v1299_v32 = vsel %vm1297_vm11, %v1293_v31, 0 }
 0x598   : > { %1308 = vmatpush.bf16.msrb.mxu1 %v1299_v32 }
 0x59c   : > { %2166 = vmatpush.xpose.msk.msra.mxu1 %vm1151_vm9, %v1435_v33 }
 0x59e   : > { %v1433_v45 = vpop.permute.xlu0 %1432 }
 0x5a8   : > { %1340 = vrot.lane.b32.xlu2 %v2887_v55, %s2514_s14 }
 0x603   : > { %v1257_v35 = vpop.xlane.xlu2 %1256 }
 0x604   : > { %2392 = vrcp.f32 %v1257_v35 }
 0x60a   : > { %v2393_v36 = vpop.eup %2392 }
 0x60b   : > { %v1341_v37 = vpop.permute.xlu2 %1340  ;;  %v1259_v38 = vmul.f32 %v2393_v36, %v2391_v26  ;;  %v2278_v36 = vld [vmem:[%s2687_s30 + $0x8] sm:$0xff] }
 0x60c   : > { %2161 = vmatpush.xpose.msk.msrb.mxu3 %vm1151_vm9, %v1341_v37  ;;  %v2277_v37 = vld [vmem:[%s2687_s30] sm:$0xff] }
 0x60d   : > { %2158 = vmatmul.msk.f32.vlgmr.msrb.gmra.mxu0 %vm1191_vm12, %v1259_v38 }
 0x60f   : > { %2162 = vmatmul.msk.f32.vlgmr.msrb.gmra.mxu3 %vm1151_vm9, %v1339_v27 }
 0x68a   : > { %v1284_v39 = vpop.f32.mrf.mxu0 }
 0x68b   : > { %v1287_v40 = vpack.c.bf16 %v1284_v39, %v1284_v39 }
 0x68d   : > { %2159 = vmatmul.msk.bf16.vlgmr.msrb.gmra.mxu1 %vm1151_vm9, %v1287_v40 }
 0x68e   : > { %1584 = vmatpush.bf16.msrb.mxu1 %v2278_v36 }
 0x692   : > { %v1363_v41 = vpop.f32.mrf.mxu3  ;;  %1585 = vmatpush.bf16.msrb.mxu1 %v2277_v37 }
 0x693   : > { %v1366_v42 = vmul.f32 0.35355338, %v1363_v41 }
 0x695   : > { %v1367_v43 = vsel %vm1177_vm10, %v1366_v42, -inf }
 0x696   : > { %1368 = vmax.xlane.f32.xlu1 %v1367_v43 }
 0x69d   : > { %2167 = vmatmul.msk.f32.vlgmr.msra.gmra.mxu1 %vm1151_vm9, %v1433_v45 }
 0x709   : > { %v1369_v46 = vpop.xlane.xlu1 %1368 }
 0x70a   : > { %v1370_v47 = vsub.f32 %v1366_v42, %v1369_v46  ;;  %v1310_v48 = vpop.f32.mrf.mxu1 }
 0x70b   : > { %v1335_v17 = vadd.f32 %v2913_v25, %v1310_v48 }
 0x70c   : > { %v1371_v49 = vmul.f32 1.442695, %v1370_v47  ;;  %v1550_v47 = vperm.slane %v2874_v44, 2 }
 0x70e   : > { %2394 = vpow2.f32 %v1371_v49 }
 0x712   : > { %v1312_v50 = vpop.f32.mrf.mxu1 }
 0x713   : > { %v1552_v50 = vperm.slane %v2874_v44, 3 }
 0x714   : > { %v2395_v51 = vpop.eup %2394 }
 0x715   : > { %v1373_v52 = vsel %vm1177_vm10, %v2395_v51, 0.0 }
 0x716   : > { %1374 = vadd.xlane.f32.xlu0 %v1373_v52 }
 0x71a   : > { %v1457_v54 = vpop.f32.mrf.mxu1 }
 0x71b   : > { %v1460_v56 = vmul.f32 0.35355338, %v1457_v54 }
 0x71d   : > { %v1461_v57 = vsel %vm1177_vm10, %v1460_v56, -inf }
 0x71e   : > { %1462 = vmax.xlane.f32.xlu2 %v1461_v57  ;;  %v2285_v57 = vld [vmem:[%s2701_s4 + $0x30] sm:$0xff] }
 0x72a   : > { %1472 = vrot.lane.b32.xlu0 %v2887_v55, %s2515_s0 }
 0x732   : > { %1501 = vrot.lane.b32.xlu0 %v1500_v59, %s2509_s13 }
 0x736   : > { %1378 = vrot.lane.b32.xlu2 %v2887_v55, %s2516_s22  ;;  %v1406_v55 = vld [vmem:[%s2678_s20 + $0x8] sm:$0xf] }
 0x737   : > { %v1408_v4 = vunpack.c.l.b16 %v1406_v55 }
 0x739   : > { %v1409_v5 = vpack.c.b16 %v1408_v4, %v1408_v4  ;;  %v2281_v4 = vld [vmem:[%s2701_s4 + $0x10] sm:$0xff] }
 0x73e   : > { %1524 = vrot.lane.b32.xlu2 %v2884_v53, %s2509_s13 }
 0x789   : > { %v1375_v60 = vpop.xlane.xlu0 %1374 }
 0x78a   : > { %2396 = vrcp.f32 %v1375_v60  ;;  %v2284_v60 = vld [vmem:[%s2701_s4 + $0x28] sm:$0xff] }
 0x790   : > { %v2397_v0 = vpop.eup %2396 }
 0x791   : > { %v1463_v61 = vpop.xlane.xlu2 %1462  ;;  %v1377_v34 = vmul.f32 %v2397_v0, %v2395_v51 }
 0x792   : > { %v1464_v62 = vsub.f32 %v1460_v56, %v1463_v61  ;;  %v2286_v56 = vld [vmem:[%s2701_s4 + $0x38] sm:$0xff] }
 0x794   : > { %v1465_v63 = vmul.f32 1.442695, %v1464_v62  ;;  %v2283_v62 = vld [vmem:[%s2701_s4 + $0x20] sm:$0xff] }
 0x796   : > { %2398 = vpow2.f32 %v1465_v63 }
 0x799   : > { %v1379_v1 = vpop.permute.xlu2 %1378 }
 0x79a   : > { %2163 = vmatpush.msk.msra.mxu0 %vm1195_vm8, %v1379_v1  ;;  %v2282_v1 = vld [vmem:[%s2701_s4 + $0x18] sm:$0xff] }
 0x79b   : > { %2164 = vmatmul.msk.f32.vlgmr.msra.gmra.mxu0 %vm1191_vm12, %v1377_v34 }
 0x79c   : > { %v2399_v2 = vpop.eup %2398  ;;  %v1473_v3 = vpop.permute.xlu0 %1472 }
 0x79d   : > { %2168 = vmatpush.msk.msra.mxu3 %vm1195_vm8, %v1473_v3  ;;  %v1467_v53 = vsel %vm1177_vm10, %v2399_v2, 0.0 }
 0x79e   : > { %1468 = vadd.xlane.f32.xlu1 %v1467_v53 }
 0x7a1   : > { %v1525_v24 = vpop.permute.xlu2 %1524 }
 0x7a4   : > { %v1502_v6 = vpop.permute.xlu0 %1501 }
 0x7a5   : > { %v1507_v7 = vsel %vm1297_vm11, %v1502_v6, 0 }
 0x7a6   : > { %1516 = vmatpush.bf16.msrb.mxu0 %v1507_v7  ;;  %v2280_v7 = vld [vmem:[%s2701_s4 + $0x8] sm:$0xff] }
 0x7b7   : > { %1410 = vrot.lane.b32.xlu1 %v1409_v5, %s2509_s13 }
 0x811   : > { %v1469_v8 = vpop.xlane.xlu1 %1468 }
 0x812   : > { %2400 = vrcp.f32 %v1469_v8 }
 0x818   : > { %v2401_v9 = vpop.eup %2400  ;;  %v1402_v11 = vpop.f32.mrf.mxu0 }
 0x819   : > { %v1471_v10 = vmul.f32 %v2401_v9, %v2399_v2  ;;  %v1405_v14 = vpack.c.bf16 %v1402_v11, %v1402_v11  ;;  %v2279_v11 = vld [vmem:[%s2701_s4] sm:$0xff] }
 0x81b   : > { %2169 = vmatmul.msk.f32.vlgmr.msra.gmra.mxu3 %vm1191_vm12, %v1471_v10 }
 0x829   : > { %v1411_v12 = vpop.permute.xlu1 %1410 }
 0x82a   : > { %v1416_v13 = vsel %vm1297_vm11, %v1411_v12, 0 }
 0x82b   : > { %1425 = vmatpush.bf16.msra.mxu2 %v1416_v13 }
 0x82e   : > { %2165 = vmatmul.msk.bf16.vlgmr.msra.gmra.mxu2 %vm1151_vm9, %v1405_v14 }
 0x82f   : > { %1704 = vmatpush.bf16.msrb.mxu2 %v2286_v56 }
 0x833   : > { %1705 = vmatpush.bf16.msrb.mxu2 %v2285_v57 }
 0x837   : > { %1706 = vmatpush.bf16.msrb.mxu2 %v2284_v60 }
 0x83b   : > { %1707 = vmatpush.bf16.msrb.mxu2 %v2283_v62 }
 0x83f   : > { %1708 = vmatpush.bf16.msrb.mxu2 %v2282_v1 }
 0x843   : > { %1709 = vmatpush.bf16.msrb.mxu2 %v2281_v4 }
 0x847   : > { %1710 = vmatpush.bf16.msrb.mxu2 %v2280_v7 }
 0x84b   : > { %1711 = vmatpush.bf16.msrb.mxu2 %v2279_v11 }
 0x89e   : > { %v1496_v15 = vpop.f32.mrf.mxu3 }
 0x89f   : > { %v1499_v16 = vpack.c.bf16 %v1496_v15, %v1496_v15 }
 0x8a1   : > { %2170 = vmatmul.msk.bf16.vlgmr.msrb.gmra.mxu0 %vm1151_vm9, %v1499_v16 }
 0x8b1   : > { %v1427_v18 = vpop.f32.mrf.mxu2 }
 0x8b2   : > { %v1431_v19 = vadd.f32 %v1427_v18, %v1335_v17 }
 0x8b9   : > { %v1429_v21 = vpop.f32.mrf.mxu2 }
 0x91e   : > { %v1518_v22 = vpop.f32.mrf.mxu0 }
 0x91f   : > { %v1522_v23 = vadd.f32 %v1518_v22, %v1431_v19 }
 0x921   : > { %v1523_v26 = vadd.f32 %v1522_v23, %v2858_v20 }
 0x923   : > { %v2946_v27 = vadd.f32 %v1525_v24, %v1523_v26 }
 0x925   : > { %v1528_v29 = vsel %vm1076_vm2, %v2946_v27, 0.0 }
 0x926   : > { %v1520_v30 = vpop.f32.mrf.mxu0  ;;  %1529 = vadd.xlane.f32.xlu1 %v1528_v29 }
 0x999   : > { %v1530_v31 = vpop.xlane.xlu1 %1529 }
 0x99a   : > { %v1531_v25 = vmul.f32 %v1530_v31, %v2862_v28 }
 0x99c   : > { %v1532_v32 = vsub.f32 %v2946_v27, %v1531_v25 }
 0x99e   : > { %v1533_v33 = vmul.f32 %v1532_v32, %v1532_v32 }
 0x9a0   : > { %v1534_v35 = vsel %vm1076_vm2, %v1533_v33, 0.0 }
 0x9a1   : > { %1535 = vadd.xlane.f32.xlu0 %v1534_v35 }
 0xa14   : > { %v1536_v20 = vpop.xlane.xlu0 %1535 }
 0xa15   : > { %v1537_v38 = vmul.f32 %v1536_v20, %v2862_v28 }
 0xa17   : > { %v1538_v39 = vadd.f32 1e-12, %v1537_v38 }
 0xa19   : > { %2402 = vrsqrt.f32 %v1538_v39  ;;  %vm1545_vm14 = vweird.f32 %v1538_v39 }
 0xa1f   : > { %v2403_v40 = vpop.eup %2402 }
 0xa20   : > { %v1540_v41 = vmul.f32 %v2403_v40, %v1538_v39  ;;  %vm1546_vm13 = vweird.f32 %v2403_v40 }
 0xa21   : > { %vm1547_vm15 = vmor %vm1545_vm14, %vm1546_vm13 }
 0xa22   : > { %v1541_v42 = vmul.f32 %v2403_v40, %v1540_v41 }
 0xa24   : > { %v1542_v43 = vmul.f32 0.5, %v1541_v42 }
 0xa26   : > { %v1543_v45 = vsub.f32 1.5, %v1542_v43  ;;  %v2381_v43 = vld [vmem:[%s568_s25] ss:$0 sm:$0xff] }
 0xa28   : > { %v1544_v46 = vmul.f32 %v2403_v40, %v1543_v45 }
 0xa2a   : > { %v1548_v48 = vsel %vm1547_vm15, %v2403_v40, %v1544_v46 }
 0xa2b   : > { %v1549_v49 = vmul.f32 %v1548_v48, %v1532_v32 }
 0xa2d   : > { %v1551_v51 = vmul.f32 %v1550_v47, %v1549_v49 }
 0xa2f   : > { %v1553_v52 = vadd.f32 %v1552_v50, %v1551_v51 }
 0xa31   : > { %v1554_v54 = vpack.c.bf16 %v1553_v52, %v1553_v52 }
 0xa33   : > { %2179 = vmatmul.msk.bf16.vlgmr.msrb.gmra.mxu1 %vm1131_vm7, %v1554_v54 }
 0xab0   : > { %v1587_v59 = vpop.f32.mrf.mxu1 }
 0xab1   : > { %v1588_v61 = vadd.f32 %v2380_v58, %v1587_v59 }
 0xab3   : > { %v1592_v44 = vmul.f32 0.70710677, %v1588_v61  ;;  %v1591_v39 = vmul.f32 0.5, %v1588_v61 }
 0xab5   : > { %v1593_v63 = vmul.f32 %v1592_v44, %v1592_v44 }
 0xab7   : > { %v1594_v0 = vmin.f32 %v1593_v63, 16.0 }
 0xab8   : > { %v1589_v34 = vpop.f32.mrf.mxu1 }
 0xab9   : > { %v1595_v2 = vmul.f32 2.1237322e-06, %v1594_v0  ;;  %v1606_v3 = vmul.f32 3.8918573e-05, %v1594_v0 }
 0xabb   : > { %v1596_v53 = vadd.f32 0.00028619796, %v1595_v2  ;;  %v1607_v55 = vadd.f32 0.001143296, %v1606_v3 }
 0xabd   : > { %v1597_v5 = vmul.f32 %v1596_v53, %v1594_v0  ;;  %v1608_v6 = vmul.f32 %v1607_v55, %v1594_v0 }
 0xabf   : > { %v1609_v8 = vadd.f32 0.014752088, %v1608_v6  ;;  %v1598_v9 = vadd.f32 0.0036580483, %v1597_v5 }
 0xac1   : > { %v1610_v10 = vmul.f32 %v1609_v8, %v1594_v0  ;;  %v1599_v13 = vmul.f32 %v1598_v9, %v1594_v0 }
 0xac3   : > { %v1611_v12 = vadd.f32 0.112945676, %v1610_v10  ;;  %v1600_v16 = vadd.f32 0.05243302, %v1599_v13 }
 0xac5   : > { %v1612_v14 = vmul.f32 %v1611_v12, %v1594_v0  ;;  %v1601_v19 = vmul.f32 %v1600_v16, %v1594_v0 }
 0xac7   : > { %v1613_v15 = vadd.f32 0.4994258, %v1612_v14  ;;  %v1602_v21 = vadd.f32 0.18741608, %v1601_v19 }
 0xac9   : > { %v1614_v17 = vmul.f32 %v1613_v15, %v1594_v0  ;;  %v1603_v23 = vmul.f32 %v1602_v21, %v1594_v0 }
 0xacb   : > { %v1615_v18 = vadd.f32 1.0, %v1614_v17  ;;  %v1604_v30 = vadd.f32 1.1283791, %v1603_v23 }
 0xacd   : > { %2404 = vrcp.f32 %v1615_v18  ;;  %v1627_v29 = vand.u32 2147483648, %v1615_v18  ;;  %v1625_v25 = vand.u32 2147483647, %v1615_v18  ;;  %vm1621_vm1 = vweird.f32 %v1615_v18 }
 0xace   : > { %v1605_v35 = vmul.f32 %v1604_v30, %v1592_v44 }
 0xacf   : > { %v1628_v33 = vor.u32 1.1754944e-38, %v1627_v29  ;;  %vm1626_vm4 = vcmp.eq.f32.partialorder %v1625_v25, 8.507059e+37 }
 0xad3   : > { %v2405_v22 = vpop.eup %2404 }
 0xad4   : > { %v1617_v24 = vmul.f32 %v2405_v22, %v1615_v18  ;;  %vm1622_vm0 = vweird.f32 %v2405_v22 }
 0xad5   : > { %vm1623_vm3 = vmor %vm1621_vm1, %vm1622_vm0 }
 0xad6   : > { %v1618_v26 = vsub.f32 1.0, %v1617_v24 }
 0xad8   : > { %v1619_v31 = vmul.f32 %v2405_v22, %v1618_v26 }
 0xada   : > { %v1620_v32 = vadd.f32 %v2405_v22, %v1619_v31 }
 0xadc   : > { %v1624_v36 = vsel %vm1623_vm3, %v2405_v22, %v1620_v32 }
 0xadd   : > { %v1629_v37 = vsel %vm1626_vm4, %v1628_v33, %v1624_v36 }
 0xade   : > { %v1630_v20 = vmul.f32 %v1629_v37, %v1605_v35 }
 0xae0   : > { %v2180_v38 = vclamps-f32 %v1630_v20, 1.0 }
 0xae2   : > { %v1633_v40 = vadd.f32 1.0, %v2180_v38 }
 0xae4   : > { %v1634_v41 = vmul.f32 %v1633_v40, %v1591_v39 }
 0xae6   : > { %v1635_v42 = vpack.c.bf16 %v1634_v41, %v1634_v41 }
 0xae8   : > { %1712 = vmatmul.bf16.vlgmr.msrb.gmra.mxu2 %v1635_v42 }
 0xb6b   : > { %v1713_v45 = vpop.f32.mrf.mxu2 }
 0xb6c   : > { %v1714_v46 = vadd.f32 %v2381_v43, %v1713_v45 }
 0xb6e   : > { %v1717_v47 = vadd.f32 %v1714_v46, %v2946_v27 }
 0xb6f   : > { %1722 = sbr.rel (%p2213_p1) target bundleno = 3337 (0xd09), region = 80 }
 0xb70   : > { %1718 = vst.msk [vmem:[#allocation2] sm:$0x1f] %vm1076_vm2, %v1717_v47 }
 0xb73   : > { %v1715_v48 = vpop.f32.mrf.mxu2 }
 0xb74   : > { %vm1725_vm5 = vcmask 253952   ;;  %v2288_v27 = vld [vmem:[%s3055_s11 + $0x8] sm:$0xff]  ;;  %v2287_v57 = vld [vmem:[%s3055_s11] sm:$0xff]  ;;  %vm1784_vm9 = vcmask 24576  }
 0xb75   : > { %v1726_v49 = vsel %vm1725_vm5, %v1717_v47, 0.0  ;;  %1777 = vmatpush.bf16.msra.mxu0 %v2288_v27  ;;  %v1723_v1 = vld [vmem:[%s3094_s23] sm:$0x1] }
 0xb76   : > { %1727 = vadd.xlane.f32.xlu0 %v1726_v49  ;;  %v1755_v5 = vld [vmem:[%s3095_s24] sm:$0x1] }
 0xb79   : > { %1778 = vmatpush.bf16.msra.mxu0 %v2287_v57 }
 0xbe9   : > { %v1728_v50 = vpop.xlane.xlu0 %1727 }
 0xbea   : > { %v1729_v51 = vmul.f32 %v1728_v50, %v2862_v28 }
 0xbec   : > { %v1730_v52 = vsub.f32 %v1717_v47, %v1729_v51 }
 0xbee   : > { %v1731_v54 = vmul.f32 %v1730_v52, %v1730_v52 }
 0xbf0   : > { %v1732_v56 = vsel %vm1725_vm5, %v1731_v54, 0.0 }
 0xbf1   : > { %1733 = vadd.xlane.f32.xlu0 %v1732_v56 }
 0xc64   : > { %v1734_v58 = vpop.xlane.xlu0 %1733 }
 0xc65   : > { %v1735_v59 = vmul.f32 %v1734_v58, %v2862_v28  ;;  %v1724_v28 = vld [vmem:[%s3094_s23 + $0x1] sm:$0x1] }
 0xc67   : > { %v1736_v60 = vadd.f32 1e-12, %v1735_v59 }
 0xc69   : > { %2406 = vrsqrt.f32 %v1736_v60  ;;  %vm1743_vm6 = vweird.f32 %v1736_v60 }
 0xc6f   : > { %v2407_v61 = vpop.eup %2406 }
 0xc70   : > { %v1738_v44 = vmul.f32 %v2407_v61, %v1736_v60  ;;  %vm1744_vm2 = vweird.f32 %v2407_v61 }
 0xc71   : > { %vm1745_vm8 = vmor %vm1743_vm6, %vm1744_vm2 }
 0xc72   : > { %v1739_v62 = vmul.f32 %v2407_v61, %v1738_v44 }
 0xc74   : > { %v1740_v63 = vmul.f32 0.5, %v1739_v62 }
 0xc76   : > { %v1741_v0 = vsub.f32 1.5, %v1740_v63 }
 0xc78   : > { %v1742_v34 = vmul.f32 %v2407_v61, %v1741_v0 }
 0xc7a   : > { %v1746_v2 = vsel %vm1745_vm8, %v2407_v61, %v1742_v34 }
 0xc7b   : > { %v1747_v3 = vmul.f32 %v1746_v2, %v1730_v52 }
 0xc7d   : > { %v1748_v53 = vmul.f32 %v1747_v3, %v1723_v1 }
 0xc7f   : > { %v1749_v55 = vadd.f32 %v1748_v53, %v1724_v28 }
 0xc81   : > { %v1750_v4 = vpack.c.bf16 %v1749_v55, %v1749_v55 }
 0xc83   : > { %2222 = vmatmul.msk.bf16.vlgmr.msra.gmra.mxu0 %vm1131_vm7, %v1750_v4 }
 0xd00   : > { %v1780_v6 = vpop.f32.mrf.mxu0 }
 0xd01   : > { %v1781_v7 = vadd.f32 %v1780_v6, %v1755_v5 }
 0xd03   : > { %1785 = vst.msk [vmem:[%s2705_s29] sm:$0x1] %vm1784_vm9, %v1781_v7 }
 0xd08   : > { %v1782_v8 = vpop.f32.mrf.mxu0 }
 0xd09 PF: > { %s3096_s12 = sld [smem:[#allocation8_spill]]  ;;  %s1797_s30 = sshll.u32 %s2705_s29, 4  ;;  %s1798_s30 = int_to_ptr.vmem [resolvable:$true] %s1797_s30 }
 0xd0a   : > { %s3097_s0 = sld [smem:[#allocation22_spill]]  ;;  %s3099_s27 = sand.u32 1, %s2478_s26  }
 0xd0b   : > { %s1787_s18 = scalar_lea.sflag [#allocation4], %s3099_s27 }
 0xd10   : > { %s1795_s20 = scalar_lea.hbm %s3097_s0, %s3096_s12  ;;  %s2428_s21 = scalar_lea.hbm %s3097_s0, 2 }
 0xd11   : > { %s1799_s4 = sshll.u32 %s1795_s20, 4  ;;  %s1800_s4 = int_to_ptr.hbm [resolvable:$true] %s1799_s4 }
 0xd12   : > { %s2422_s25 = sshra.s32 %s1800_s4, 4  ;;  %s2423_s25 = int_to_ptr.hbm [resolvable:$true] %s2422_s25 }
 0xd13   : > { %s2424_s3 = scalar_lea.hbm %s2423_s25, 1  ;;  %p2429_p6 = scmp.lt.s32.totalorder %s2423_s25, %s3097_s0 }
 0xd14   : > { %p2425_p2 = scmp.ne.s32.totalorder %s2423_s25, %s2424_s3  ;;  %p2430_p7 = scmp.lt.s32.totalorder %s2428_s21, %s2424_s3 }
 0xd16   : > { %p2426_p4 = pnand %p2425_p2, %p2636_p3  ;;  %p2431_p8 = por %p2430_p7, %p2429_p6 }
 0xd18   : > { %p2427_p5 = pneg %p2426_p4 }
 0xd1a   : > { %p2432_p10 = pnand %p2431_p8, %p2427_p5 }
 0xd1c   : > { %2435 = shalt.err (!%p2432_p10)
}
 0xd1d   : > { %2295 = dma.vmem_to_hbm [thread:$0]  (%p2636_p3), %s1798_s30, 16, %s1800_s4, %s1787_s18  }
 0xd1e PF: > { %s3100_s29 = sld [smem:[#allocation11_spill]] }
 0xd1f   : > { %s3101_s13 = sld [smem:[#allocation6_spill]] }
 0xd24   : > { %p2301_p11 = scmp.ge.s32.totalorder %s3100_s29, 2 }
 0xd25   : > { %s1811_s24 = sand.u32 1, %s3101_s13  }
 0xd26   : > { %p2298_p12 = pnand %p2301_p11, %p2646_p9  ;;  %s1812_s12 = scalar_lea.sflag [#allocation4], %s1811_s24 }
 0xd28   : > { %p2299_p13 = pneg %p2298_p12 }
 0xd2a   : > { %2469 = dma.done.wait (%p2299_p13), %s1812_s12, 16  }
 0xd2b   : > { %2471 = vsyncadd (%p2299_p13), %s1812_s12, 4294967280  ;;  %s26_s15 = sadd.s32 1, %s3100_s29   ;;  %s3103_s19 = sld [smem:[#allocation7_spill]] }
 0xd2c   : > { %p23_p0 = scmp.ge.s32.totalorder %s26_s15, 6   ;;  %s3104_s27 = sld [smem:[#allocation16_spill]] }
 0xd2d   : > { %s3105_s28 = sld [smem:[#allocation9_spill]]  ;;  %s3109_s25 = smov %s2478_s26 }
 0xd2e   : > { %s3106_s29 = sld [smem:[#allocation10_spill]]  ;;  %25 = sbr.rel (!%p23_p0) target bundleno = 12 (0xc), region = 138 }
 0xd2f   : > { %s3107_s30 = sld [smem:[#allocation12_spill]] }
 0xd30   : > { %s3108_s14 = sld [smem:[#allocation14_spill]] }
 0xd31   : > { %s3110_s26 = smov %s3103_s19 }
 0xd33   :  { %1817 = vsyncpa [#allocation4], 1 }
 0xd34   :  { %1819 = vsyncpa [#allocation4 + $0x1], 1 }

</bundles_post_ra>
